<compile_context>
chip_gen: v7x
topology: tpu7x:2x2x1
jax: 0.10.0
libtpu: 0.0.40
codegen_flags: <defaults>
</compile_context>

<pallas_src>
import functools
import math

import jax
import jax.numpy as jnp
from jax.experimental import pallas as pl
from jax.experimental.pallas import tpu as pltpu


def _vmem_limit_bytes():
    # ~100 MiB on 128-MiB parts (v5e/v6e), capacity - 16 MiB otherwise (v7x).
    try:
        cap = pltpu.get_tpu_info().vmem_capacity_bytes
    except Exception:
        cap = 64 * 1024 * 1024
    return int(max(32 * 1024 * 1024,
                   min(100 * 1024 * 1024, cap - 16 * 1024 * 1024)))


# ----------------------------------------------------------------------------
# In-kernel helpers (all f32 elementwise math — safe on v5e's f32-only VPU/EUP)
# ----------------------------------------------------------------------------
def _layer_norm(v, g, b, eps=1e-6):
    mu = jnp.mean(v, axis=-1, keepdims=True)
    var = jnp.mean(jnp.square(v - mu), axis=-1, keepdims=True)
    return (v - mu) * jax.lax.rsqrt(var + eps) * g + b


def _gelu_tanh(x):
    # PreSumm's gelu: 0.5*x*(1+tanh(sqrt(2/pi)*(x+0.044715*x^3)))
    c = jnp.float32(0.7978845608028654)
    return 0.5 * x * (1.0 + jnp.tanh(c * (x + 0.044715 * x * x * x)))


# ----------------------------------------------------------------------------
# Pallas kernel 1: fused transformer stack (MHA + FFN per layer), grid = (B, L).
# Activation resident in VMEM scratch across the layer axis. Optional fused
# scoring head (LN -> Linear(H,1) -> sigmoid -> mask) on the last layer.
# ----------------------------------------------------------------------------
def _stack_kernel(n_heads, always_prenorm, with_head, *args):
    if with_head:
        (x_ref, m_ref,
         wq_ref, bq_ref, wk_ref, bk_ref, wv_ref, bv_ref, wo_ref, bo_ref,
         g1_ref, be1_ref, w1_ref, bf1_ref, w2_ref, bf2_ref, g2_ref, be2_ref,
         fg_ref, fb_ref, fw_ref, fbo_ref,
         out_ref, x_sc) = args
    else:
        (x_ref, m_ref,
         wq_ref, bq_ref, wk_ref, bk_ref, wv_ref, bv_ref, wo_ref, bo_ref,
         g1_ref, be1_ref, w1_ref, bf1_ref, w2_ref, bf2_ref, g2_ref, be2_ref,
         out_ref, x_sc) = args

    l = pl.program_id(1)
    last = pl.num_programs(1) - 1

    @pl.when(l == 0)
    def _():
        x_sc[...] = x_ref[0].astype(jnp.float32)

    x = x_sc[...]                                  # (S, H) f32, VMEM-resident
    key_mask = m_ref[0].astype(jnp.float32)        # (1, S): 1.0 = valid key
    S, H = x.shape
    dh = H // n_heads

    # Pre-attention LayerNorm (layer 0 of the ext stack skips it, per PreSumm).
    ln1 = _layer_norm(x, g1_ref[0], be1_ref[0])
    if always_prenorm:
        xn = ln1
    else:
        flag = (l > 0).astype(jnp.float32)
        xn = flag * ln1 + (1.0 - flag) * x

    xb = xn.astype(jnp.bfloat16)
    q = jnp.dot(xb, wq_ref[0], preferred_element_type=jnp.float32) + bq_ref[0]
    k = jnp.dot(xb, wk_ref[0], preferred_element_type=jnp.float32) + bk_ref[0]
    v = jnp.dot(xb, wv_ref[0], preferred_element_type=jnp.float32) + bv_ref[0]

    scale = jnp.float32(1.0 / math.sqrt(dh))
    neg = jnp.float32(-1e9)
    attn = jnp.zeros((S, H), jnp.float32)
    for h in range(n_heads):                       # static unroll over heads
        lo = h * dh
        qh = (q[:, lo:lo + dh] * scale).astype(jnp.bfloat16)
        kh = k[:, lo:lo + dh].astype(jnp.bfloat16)
        vh = v[:, lo:lo + dh].astype(jnp.bfloat16)
        s = jnp.einsum('qd,kd->qk', qh, kh, preferred_element_type=jnp.float32)
        s = jnp.where(key_mask > 0.0, s, neg)                      # mask keys
        s = s - jnp.max(s, axis=-1, keepdims=True)
        p = jnp.exp(s)
        p = p * pl.reciprocal(jnp.sum(p, axis=-1, keepdims=True), approx=True)
        ctx_h = jnp.dot(p.astype(jnp.bfloat16), vh,
                        preferred_element_type=jnp.float32)        # (S, dh)
        # Fold this head directly into the output projection (no concat).
        attn = attn + jnp.dot(ctx_h.astype(jnp.bfloat16),
                              wo_ref[0, lo:lo + dh, :],
                              preferred_element_type=jnp.float32)
    out1 = attn + bo_ref[0] + x                    # residual (dropout=identity)

    # PositionwiseFeedForward: LN -> W1 -> gelu -> W2 -> residual
    on = _layer_norm(out1, g2_ref[0], be2_ref[0])
    inter = _gelu_tanh(jnp.dot(on.astype(jnp.bfloat16), w1_ref[0],
                               preferred_element_type=jnp.float32) + bf1_ref[0])
    ff = jnp.dot(inter.astype(jnp.bfloat16), w2_ref[0],
                 preferred_element_type=jnp.float32) + bf2_ref[0]
    y = ff + out1
    x_sc[...] = y

    if with_head:
        @pl.when(l == last)
        def _():
            hn = _layer_norm(y, fg_ref[...], fb_ref[...])
            sc = jnp.einsum('oh,nh->on', fw_ref[...], hn,
                            preferred_element_type=jnp.float32) + fbo_ref[...]
            sig = pl.reciprocal(1.0 + jnp.exp(-sc), approx=True)
            out_ref[0] = (sig * key_mask).astype(out_ref.dtype)    # (1, N)
    else:
        @pl.when(l == last)
        def _():
            out_ref[0] = y.astype(out_ref.dtype)


def transformer_stack(x, mask3, sp, *, n_heads, always_prenorm, head=None):
    B, S, H = x.shape
    L = sp['wq'].shape[0]
    names = ['wq', 'bq', 'wk', 'bk', 'wv', 'bv', 'wo', 'bo',
             'ln1g', 'ln1b', 'w1', 'b1', 'w2', 'b2', 'ln2g', 'ln2b']
    weights = [sp[n] for n in names]
    w_specs = [pl.BlockSpec((1,) + w.shape[1:], lambda b, l: (l, 0, 0))
               for w in weights]
    in_specs = [pl.BlockSpec((1, S, H), lambda b, l: (b, 0, 0)),
                pl.BlockSpec((1, 1, S), lambda b, l: (b, 0, 0))] + w_specs
    args = [x, mask3] + weights

    with_head = head is not None
    if with_head:
        head_ws = [head['g'], head['b'], head['w'], head['bo']]
        in_specs += [pl.BlockSpec(w.shape, lambda b, l: (0, 0)) for w in head_ws]
        args += head_ws
        out_spec = pl.BlockSpec((1, 1, S), lambda b, l: (b, 0, 0))
        out_shape = jax.ShapeDtypeStruct((B, 1, S), jnp.float32)
    else:
        out_spec = pl.BlockSpec((1, S, H), lambda b, l: (b, 0, 0))
        out_shape = jax.ShapeDtypeStruct((B, S, H), jnp.float32)

    kern = functools.partial(_stack_kernel, n_heads, always_prenorm, with_head)
    return pl.pallas_call(
        kern,
        out_shape=out_shape,
        grid_spec=pltpu.PrefetchScalarGridSpec(
            num_scalar_prefetch=0,
            grid=(B, L),
            in_specs=in_specs,
            out_specs=out_spec,
            scratch_shapes=[pltpu.VMEM((S, H), jnp.float32)]),
        compiler_params=pltpu.CompilerParams(
            dimension_semantics=("parallel", "arbitrary"),
            vmem_limit_bytes=_vmem_limit_bytes()),
    )(*args)


# ----------------------------------------------------------------------------
# Pallas kernel 2: CLS-row gather. Only the N needed rows of top_vec are DMA'd
# (scalar-prefetched clss, HBM-resident top_vec, per-row async copies), then
#   out[b, n, :] = top_vec[b, clss[b, n], :] * mask_cls[b, n] + pe[n, :]
# is written with a single full-block store.
# ----------------------------------------------------------------------------
def _gather_prep_kernel(n_sents, seq_len, clss_ref,
                        top_hbm, mask_ref, pe_ref, out_ref, rows_sc, sem):
    b = pl.program_id(0)

    def row_copy(n):
        idx = b * seq_len + jnp.maximum(clss_ref[b, n], 0)
        return pltpu.make_async_copy(top_hbm.at[pl.ds(idx, 1), :],
                                     rows_sc.at[pl.ds(n, 1), :],
                                     sem.at[n])

    for n in range(n_sents):
        row_copy(n).start()
    for n in range(n_sents):
        row_copy(n).wait()

    rows = rows_sc[...].astype(jnp.float32)                       # (N, H)
    out_ref[0] = (rows * mask_ref[0] + pe_ref[...]).astype(out_ref.dtype)


def gather_prep(top_vec, clss, mask_n1, pe):
    B, S, H = top_vec.shape
    N = clss.shape[1]
    top_flat = top_vec.reshape(B * S, H)
    kern = functools.partial(_gather_prep_kernel, N, S)
    return pl.pallas_call(
        kern,
        out_shape=jax.ShapeDtypeStruct((B, N, H), jnp.float32),
        grid_spec=pltpu.PrefetchScalarGridSpec(
            num_scalar_prefetch=1,
            grid=(B,),
            in_specs=[pl.BlockSpec(memory_space=pl.ANY),
                      pl.BlockSpec((1, N, 1), lambda b, c: (b, 0, 0)),
                      pl.BlockSpec((N, H), lambda b, c: (0, 0))],
            out_specs=pl.BlockSpec((1, N, H), lambda b, c: (b, 0, 0)),
            scratch_shapes=[pltpu.VMEM((N, H), jnp.float32),
                            pltpu.SemaphoreType.DMA((N,))]),
        compiler_params=pltpu.CompilerParams(
            dimension_semantics=("arbitrary",),
            vmem_limit_bytes=_vmem_limit_bytes()),
    )(clss, top_flat, mask_n1, pe)


# ----------------------------------------------------------------------------
# Parameter setup (deterministic, synthetic — no checkpoint load).
# Matmul weights are stored stacked over layers in bf16.
# ----------------------------------------------------------------------------
def _glorot(key, shape, stack=None):
    limit = math.sqrt(6.0 / (shape[0] + shape[1]))
    full = shape if stack is None else (stack,) + shape
    return jax.random.uniform(key, full, jnp.float32, -limit, limit)


def _init_stack(key, L, H, FF):
    ks = jax.random.split(key, 6)
    z = lambda d: jnp.zeros((L, 1, d), jnp.float32)
    one = lambda d: jnp.ones((L, 1, d), jnp.float32)
    bf = jnp.bfloat16
    return dict(
        wq=_glorot(ks[0], (H, H), L).astype(bf), bq=z(H),
        wk=_glorot(ks[1], (H, H), L).astype(bf), bk=z(H),
        wv=_glorot(ks[2], (H, H), L).astype(bf), bv=z(H),
        wo=_glorot(ks[3], (H, H), L).astype(bf), bo=z(H),
        ln1g=one(H), ln1b=z(H),
        w1=_glorot(ks[4], (H, FF), L).astype(bf), b1=z(FF),
        w2=_glorot(ks[5], (FF, H), L).astype(bf), b2=z(H),
        ln2g=one(H), ln2b=z(H),
    )


def init_params(key, *, H, FF, NH, vocab, xl_layers, ext_layers):
    ks = jax.random.split(key, 5)
    return dict(
        n_heads=NH,
        word_emb=0.02 * jax.random.normal(ks[0], (vocab, H), jnp.float32),
        seg_emb=0.02 * jax.random.normal(ks[1], (2, H), jnp.float32),
        xlnet_stack=_init_stack(ks[2], xl_layers, H, FF),
        ext_stack=_init_stack(ks[3], ext_layers, H, FF),
        final=dict(
            g=jnp.ones((1, H), jnp.float32), b=jnp.zeros((1, H), jnp.float32),
            w=_glorot(ks[4], (H, 1))[:, 0][None, :],   # stored as a (1, H) row
            bo=jnp.zeros((1, 1), jnp.float32),
        ),
    )


def sinusoid_pe(n, dim):
    position = jnp.arange(n, dtype=jnp.float32)[:, None]
    div_term = jnp.exp(jnp.arange(0, dim, 2, dtype=jnp.float32)
                       * (-math.log(10000.0) / dim))
    pe = jnp.zeros((n, dim), jnp.float32)
    pe = pe.at[:, 0::2].set(jnp.sin(position * div_term))
    pe = pe.at[:, 1::2].set(jnp.cos(position * div_term))
    return pe


# ----------------------------------------------------------------------------
# ExtSummarizer.forward
# ----------------------------------------------------------------------------
def ext_summarizer_forward(params, src, segs, clss, mask_src, mask_cls):
    B, S = src.shape
    N = clss.shape[1]
    NH = params['n_heads']
    H = params['word_emb'].shape[1]

    # --- self.xlnet(src, segs, mask_src) -> top_vec  (synthetic stand-in stack)
    x = (jnp.take(params['word_emb'], src, axis=0)
         + jnp.take(params['seg_emb'], segs, axis=0))
    mask_src3 = mask_src.astype(jnp.float32).reshape(B, 1, S)
    top_vec = transformer_stack(x, mask_src3, params['xlnet_stack'],
                                n_heads=NH, always_prenorm=True)       # [B, S, H]

    # --- sents_vec = top_vec[arange(B)[:, None], clss] * mask_cls ; + pos-emb
    mask_cls_f = mask_cls.astype(jnp.float32)
    pe = sinusoid_pe(N, H)
    sents = gather_prep(top_vec, clss.astype(jnp.int32),
                        mask_cls_f.reshape(B, N, 1), pe)               # [B, N, H]

    # --- ExtTransformerEncoder inter layers + fused LN/Linear(H,1)/sigmoid head
    mask_cls3 = mask_cls_f.reshape(B, 1, N)
    scores = transformer_stack(sents, mask_cls3, params['ext_stack'],
                               n_heads=NH, always_prenorm=False,
                               head=params['final'])                   # [B, 1, N]
    sent_scores = scores[:, 0, :]                                      # [B, N]
    return sent_scores, mask_cls


# ----------------------------------------------------------------------------
if __name__ == "__main__":
    B, S, H, FF, NH, N, VOCAB = 2, 16, 32, 64, 4, 4, 50
    XL_LAYERS, EXT_LAYERS = 2, 2

    root = jax.random.PRNGKey(0)
    kp, kd = jax.random.split(root)
    params = init_params(kp, H=H, FF=FF, NH=NH, vocab=VOCAB,
                         xl_layers=XL_LAYERS, ext_layers=EXT_LAYERS)

    src = jax.random.randint(kd, (B, S), 0, VOCAB, dtype=jnp.int32)
    segs = jnp.tile((jnp.arange(S) >= S // 2).astype(jnp.int32)[None, :], (B, 1))
    clss = jnp.array([[0, 5, 10, 14],
                      [0, 4, 9, 13]], dtype=jnp.int32)
    mask_src = jnp.concatenate(
        [jnp.ones((1, S), jnp.float32),
         jnp.concatenate([jnp.ones((1, S - 2)), jnp.zeros((1, 2))], axis=1)],
        axis=0)
    mask_cls = jnp.array([[1, 1, 1, 1],
                          [1, 1, 1, 0]], dtype=jnp.float32)

    sent_scores, out_mask = ext_summarizer_forward(
        params, src, segs, clss, mask_src, mask_cls)
    jax.block_until_ready(sent_scores)

    assert sent_scores.shape == (B, N)
    assert out_mask.shape == (B, N)
    print("KERNEL_OK")
</pallas_src>

<mosaic_0001>
module attributes {stable_mosaic.version = 11 : i64} {
  func.func @_stack_kernel(%arg0: i32, %arg1: i32, %arg2: memref<1x16x32xf32, #tpu.memory_space<vmem>>, %arg3: memref<1x1x16xf32, #tpu.memory_space<vmem>>, %arg4: memref<1x32x32xbf16, #tpu.memory_space<vmem>>, %arg5: memref<1x1x32xf32, #tpu.memory_space<vmem>>, %arg6: memref<1x32x32xbf16, #tpu.memory_space<vmem>>, %arg7: memref<1x1x32xf32, #tpu.memory_space<vmem>>, %arg8: memref<1x32x32xbf16, #tpu.memory_space<vmem>>, %arg9: memref<1x1x32xf32, #tpu.memory_space<vmem>>, %arg10: memref<1x32x32xbf16, #tpu.memory_space<vmem>>, %arg11: memref<1x1x32xf32, #tpu.memory_space<vmem>>, %arg12: memref<1x1x32xf32, #tpu.memory_space<vmem>>, %arg13: memref<1x1x32xf32, #tpu.memory_space<vmem>>, %arg14: memref<1x32x64xbf16, #tpu.memory_space<vmem>>, %arg15: memref<1x1x64xf32, #tpu.memory_space<vmem>>, %arg16: memref<1x64x32xbf16, #tpu.memory_space<vmem>>, %arg17: memref<1x1x32xf32, #tpu.memory_space<vmem>>, %arg18: memref<1x1x32xf32, #tpu.memory_space<vmem>>, %arg19: memref<1x1x32xf32, #tpu.memory_space<vmem>>, %arg20: memref<1x16x32xf32, #tpu.memory_space<vmem>>, %arg21: memref<16x32xf32, #tpu.memory_space<vmem>>) attributes {dimension_semantics = [#tpu.dimension_semantics<parallel>, #tpu.dimension_semantics<arbitrary>], iteration_bounds = array<i64: 2, 2>, scalar_prefetch = 0 : i64, scratch_operands = 1 : i64, tpu.core_type = #tpu.core_type<tc>, window_params = [{transform_indices = @transform_0, window_bounds = array<i64: 1, 16, 32>}, {transform_indices = @transform_1, window_bounds = array<i64: 1, 1, 16>}, {transform_indices = @transform_2, window_bounds = array<i64: 1, 32, 32>}, {transform_indices = @transform_3, window_bounds = array<i64: 1, 1, 32>}, {transform_indices = @transform_4, window_bounds = array<i64: 1, 32, 32>}, {transform_indices = @transform_5, window_bounds = array<i64: 1, 1, 32>}, {transform_indices = @transform_6, window_bounds = array<i64: 1, 32, 32>}, {transform_indices = @transform_7, window_bounds = array<i64: 1, 1, 32>}, {transform_indices = @transform_8, window_bounds = array<i64: 1, 32, 32>}, {transform_indices = @transform_9, window_bounds = array<i64: 1, 1, 32>}, {transform_indices = @transform_10, window_bounds = array<i64: 1, 1, 32>}, {transform_indices = @transform_11, window_bounds = array<i64: 1, 1, 32>}, {transform_indices = @transform_12, window_bounds = array<i64: 1, 32, 64>}, {transform_indices = @transform_13, window_bounds = array<i64: 1, 1, 64>}, {transform_indices = @transform_14, window_bounds = array<i64: 1, 64, 32>}, {transform_indices = @transform_15, window_bounds = array<i64: 1, 1, 32>}, {transform_indices = @transform_16, window_bounds = array<i64: 1, 1, 32>}, {transform_indices = @transform_17, window_bounds = array<i64: 1, 1, 32>}, {transform_indices = @transform_18, window_bounds = array<i64: 1, 16, 32>}]} {
    %c0_i32 = arith.constant 0 : i32
    %0 = arith.cmpi eq, %arg1, %c0_i32 : i32
    %1 = arith.extui %0 : i1 to i32
    %c0_i32_0 = arith.constant 0 : i32
    %2 = arith.cmpi ne, %1, %c0_i32_0 : i32
    scf.if %2 {
      %c0_113 = arith.constant 0 : index
      %c0_114 = arith.constant 0 : index
      %c0_115 = arith.constant 0 : index
      %248 = vector.load %arg2[%c0_113, %c0_114, %c0_115] : memref<1x16x32xf32, #tpu.memory_space<vmem>>, vector<1x16x32xf32>
      %249 = vector.shape_cast %248 : vector<1x16x32xf32> to vector<16x32xf32>
      %c0_116 = arith.constant 0 : index
      %c0_117 = arith.constant 0 : index
      %250 = vector.load %arg21[%c0_116, %c0_117] : memref<16x32xf32, #tpu.memory_space<vmem>>, vector<16x32xf32>
      tpu.vector_store %arg21[%c0_116, %c0_117], %249 {strides = array<i32>} : memref<16x32xf32, #tpu.memory_space<vmem>>, vector<16x32xf32>,
    } else {
    }
    %c0 = arith.constant 0 : index
    %c0_1 = arith.constant 0 : index
    %3 = vector.load %arg21[%c0, %c0_1] : memref<16x32xf32, #tpu.memory_space<vmem>>, vector<16x32xf32>
    %c0_2 = arith.constant 0 : index
    %c0_3 = arith.constant 0 : index
    %c0_4 = arith.constant 0 : index
    %4 = vector.load %arg3[%c0_2, %c0_3, %c0_4] : memref<1x1x16xf32, #tpu.memory_space<vmem>>, vector<1x1x16xf32>
    %5 = vector.shape_cast %4 : vector<1x1x16xf32> to vector<1x16xf32>
    %c0_5 = arith.constant 0 : index
    %c0_6 = arith.constant 0 : index
    %c0_7 = arith.constant 0 : index
    %6 = vector.load %arg12[%c0_5, %c0_6, %c0_7] : memref<1x1x32xf32, #tpu.memory_space<vmem>>, vector<1x1x32xf32>
    %7 = vector.shape_cast %6 : vector<1x1x32xf32> to vector<1x32xf32>
    %c0_8 = arith.constant 0 : index
    %c0_9 = arith.constant 0 : index
    %c0_10 = arith.constant 0 : index
    %8 = vector.load %arg13[%c0_8, %c0_9, %c0_10] : memref<1x1x32xf32, #tpu.memory_space<vmem>>, vector<1x1x32xf32>
    %9 = vector.shape_cast %8 : vector<1x1x32xf32> to vector<1x32xf32>
    %cst = arith.constant dense<0.000000e+00> : vector<16xf32>
    %10 = vector.multi_reduction <add>, %3, %cst [1] : vector<16x32xf32> to vector<16xf32>
    %11 = vector.shape_cast %10 : vector<16xf32> to vector<16x1xf32>
    %cst_11 = arith.constant 3.200000e+01 : f32
    %12 = vector.broadcast %cst_11 : f32 to vector<16x1xf32>
    %13 = arith.divf %11, %12 : vector<16x1xf32>
    %14 = vector.broadcast %13 : vector<16x1xf32> to vector<16x32xf32>
    %15 = arith.subf %3, %14 : vector<16x32xf32>
    %16 = arith.mulf %15, %15 : vector<16x32xf32>
    %cst_12 = arith.constant dense<0.000000e+00> : vector<16xf32>
    %17 = vector.multi_reduction <add>, %16, %cst_12 [1] : vector<16x32xf32> to vector<16xf32>
    %18 = vector.shape_cast %17 : vector<16xf32> to vector<16x1xf32>
    %cst_13 = arith.constant 3.200000e+01 : f32
    %19 = vector.broadcast %cst_13 : f32 to vector<16x1xf32>
    %20 = arith.divf %18, %19 : vector<16x1xf32>
    %21 = vector.broadcast %13 : vector<16x1xf32> to vector<16x32xf32>
    %22 = arith.subf %3, %21 : vector<16x32xf32>
    %cst_14 = arith.constant 9.99999997E-7 : f32
    %23 = vector.broadcast %cst_14 : f32 to vector<16x1xf32>
    %24 = arith.addf %20, %23 : vector<16x1xf32>
    %25 = math.rsqrt %24 : vector<16x1xf32>
    %26 = vector.broadcast %25 : vector<16x1xf32> to vector<16x32xf32>
    %27 = arith.mulf %22, %26 : vector<16x32xf32>
    %28 = vector.broadcast %7 : vector<1x32xf32> to vector<16x32xf32>
    %29 = arith.mulf %27, %28 : vector<16x32xf32>
    %30 = vector.broadcast %9 : vector<1x32xf32> to vector<16x32xf32>
    %31 = arith.addf %29, %30 : vector<16x32xf32>
    %32 = arith.truncf %31 : vector<16x32xf32> to vector<16x32xbf16>
    %c0_15 = arith.constant 0 : index
    %c0_16 = arith.constant 0 : index
    %c0_17 = arith.constant 0 : index
    %33 = vector.load %arg4[%c0_15, %c0_16, %c0_17] : memref<1x32x32xbf16, #tpu.memory_space<vmem>>, vector<1x32x32xbf16>
    %34 = vector.shape_cast %33 : vector<1x32x32xbf16> to vector<32x32xbf16>
    %cst_18 = arith.constant dense<0.000000e+00> : vector<16x32xf32>
    %35 = tpu.matmul %32, %34, %cst_18 {dimension_numbers = #tpu.dot_dimension_numbers<[1], [0], [0], [1], [0, 0, 1, 1], [], []>} : vector<16x32xbf16>, vector<32x32xbf16>, vector<16x32xf32> -> vector<16x32xf32>
    %c0_19 = arith.constant 0 : index
    %c0_20 = arith.constant 0 : index
    %c0_21 = arith.constant 0 : index
    %36 = vector.load %arg5[%c0_19, %c0_20, %c0_21] : memref<1x1x32xf32, #tpu.memory_space<vmem>>, vector<1x1x32xf32>
    %37 = vector.shape_cast %36 : vector<1x1x32xf32> to vector<1x32xf32>
    %38 = vector.broadcast %37 : vector<1x32xf32> to vector<16x32xf32>
    %39 = arith.addf %35, %38 : vector<16x32xf32>
    %c0_22 = arith.constant 0 : index
    %c0_23 = arith.constant 0 : index
    %c0_24 = arith.constant 0 : index
    %40 = vector.load %arg6[%c0_22, %c0_23, %c0_24] : memref<1x32x32xbf16, #tpu.memory_space<vmem>>, vector<1x32x32xbf16>
    %41 = vector.shape_cast %40 : vector<1x32x32xbf16> to vector<32x32xbf16>
    %cst_25 = arith.constant dense<0.000000e+00> : vector<16x32xf32>
    %42 = tpu.matmul %32, %41, %cst_25 {dimension_numbers = #tpu.dot_dimension_numbers<[1], [0], [0], [1], [0, 0, 1, 1], [], []>} : vector<16x32xbf16>, vector<32x32xbf16>, vector<16x32xf32> -> vector<16x32xf32>
    %c0_26 = arith.constant 0 : index
    %c0_27 = arith.constant 0 : index
    %c0_28 = arith.constant 0 : index
    %43 = vector.load %arg7[%c0_26, %c0_27, %c0_28] : memref<1x1x32xf32, #tpu.memory_space<vmem>>, vector<1x1x32xf32>
    %44 = vector.shape_cast %43 : vector<1x1x32xf32> to vector<1x32xf32>
    %45 = vector.broadcast %44 : vector<1x32xf32> to vector<16x32xf32>
    %46 = arith.addf %42, %45 : vector<16x32xf32>
    %c0_29 = arith.constant 0 : index
    %c0_30 = arith.constant 0 : index
    %c0_31 = arith.constant 0 : index
    %47 = vector.load %arg8[%c0_29, %c0_30, %c0_31] : memref<1x32x32xbf16, #tpu.memory_space<vmem>>, vector<1x32x32xbf16>
    %48 = vector.shape_cast %47 : vector<1x32x32xbf16> to vector<32x32xbf16>
    %cst_32 = arith.constant dense<0.000000e+00> : vector<16x32xf32>
    %49 = tpu.matmul %32, %48, %cst_32 {dimension_numbers = #tpu.dot_dimension_numbers<[1], [0], [0], [1], [0, 0, 1, 1], [], []>} : vector<16x32xbf16>, vector<32x32xbf16>, vector<16x32xf32> -> vector<16x32xf32>
    %c0_33 = arith.constant 0 : index
    %c0_34 = arith.constant 0 : index
    %c0_35 = arith.constant 0 : index
    %50 = vector.load %arg9[%c0_33, %c0_34, %c0_35] : memref<1x1x32xf32, #tpu.memory_space<vmem>>, vector<1x1x32xf32>
    %51 = vector.shape_cast %50 : vector<1x1x32xf32> to vector<1x32xf32>
    %52 = vector.broadcast %51 : vector<1x32xf32> to vector<16x32xf32>
    %53 = arith.addf %49, %52 : vector<16x32xf32>
    %cst_36 = arith.constant 0.000000e+00 : f32
    %54 = vector.broadcast %cst_36 : f32 to vector<16x32xf32>
    %55 = vector.extract_strided_slice %39 {offsets = [0, 0], sizes = [16, 8], strides = [1, 1]} : vector<16x32xf32> to vector<16x8xf32>
    %cst_37 = arith.constant 0.353553385 : f32
    %56 = vector.broadcast %cst_37 : f32 to vector<16x8xf32>
    %57 = arith.mulf %55, %56 : vector<16x8xf32>
    %58 = arith.truncf %57 : vector<16x8xf32> to vector<16x8xbf16>
    %59 = vector.extract_strided_slice %46 {offsets = [0, 0], sizes = [16, 8], strides = [1, 1]} : vector<16x32xf32> to vector<16x8xf32>
    %60 = arith.truncf %59 : vector<16x8xf32> to vector<16x8xbf16>
    %61 = vector.extract_strided_slice %53 {offsets = [0, 0], sizes = [16, 8], strides = [1, 1]} : vector<16x32xf32> to vector<16x8xf32>
    %62 = arith.truncf %61 : vector<16x8xf32> to vector<16x8xbf16>
    "tpu.trace_start"() <{level = 10 : i32, message = "qd,kd->qk"}> : () -> ()
    %cst_38 = arith.constant dense<0.000000e+00> : vector<16x16xf32>
    %63 = tpu.matmul %58, %60, %cst_38 {dimension_numbers = #tpu.dot_dimension_numbers<[1], [1], [0], [0], [0, 0, 1, 0], [], []>} : vector<16x8xbf16>, vector<16x8xbf16>, vector<16x16xf32> -> vector<16x16xf32>
    %cst_39 = arith.constant 0.000000e+00 : f32
    "tpu.trace_stop"() : () -> ()
    %64 = vector.broadcast %cst_39 : f32 to vector<1x16xf32>
    %65 = arith.cmpf ogt, %5, %64 : vector<1x16xf32>
    %cst_40 = arith.constant -1.000000e+09 : f32
    %66 = vector.shape_cast %65 : vector<1x16xi1> to vector<1x16xi1>
    %67 = vector.broadcast %66 : vector<1x16xi1> to vector<16x16xi1>
    %68 = vector.broadcast %cst_40 : f32 to vector<16x16xf32>
    %69 = arith.select %67, %63, %68 : vector<16x16xi1>, vector<16x16xf32>
    %cst_41 = arith.constant dense<0xFF800000> : vector<16xf32>
    %70 = vector.multi_reduction <maximumf>, %69, %cst_41 [1] : vector<16x16xf32> to vector<16xf32>
    %71 = vector.shape_cast %70 : vector<16xf32> to vector<16x1xf32>
    %72 = vector.broadcast %71 : vector<16x1xf32> to vector<16x16xf32>
    %73 = arith.subf %69, %72 : vector<16x16xf32>
    %74 = math.exp %73 : vector<16x16xf32>
    %cst_42 = arith.constant dense<0.000000e+00> : vector<16xf32>
    %75 = vector.multi_reduction <add>, %74, %cst_42 [1] : vector<16x16xf32> to vector<16xf32>
    %76 = vector.shape_cast %75 : vector<16xf32> to vector<16x1xf32>
    %77 = tpu.reciprocal %76 {approx = true} : vector<16x1xf32> -> vector<16x1xf32>
    %78 = vector.broadcast %77 : vector<16x1xf32> to vector<16x16xf32>
    %79 = arith.mulf %74, %78 : vector<16x16xf32>
    %80 = arith.truncf %79 : vector<16x16xf32> to vector<16x16xbf16>
    %cst_43 = arith.constant dense<0.000000e+00> : vector<16x8xf32>
    %81 = tpu.matmul %80, %62, %cst_43 {dimension_numbers = #tpu.dot_dimension_numbers<[1], [0], [0], [1], [0, 0, 1, 1], [], []>} : vector<16x16xbf16>, vector<16x8xbf16>, vector<16x8xf32> -> vector<16x8xf32>
    %82 = arith.truncf %81 : vector<16x8xf32> to vector<16x8xbf16>
    %c0_44 = arith.constant 0 : index
    %c0_45 = arith.constant 0 : index
    %c0_46 = arith.constant 0 : index
    %83 = vector.load %arg10[%c0_44, %c0_45, %c0_46] : memref<1x32x32xbf16, #tpu.memory_space<vmem>>, vector<1x8x32xbf16>
    %84 = vector.shape_cast %83 : vector<1x8x32xbf16> to vector<8x32xbf16>
    %cst_47 = arith.constant dense<0.000000e+00> : vector<16x32xf32>
    %85 = tpu.matmul %82, %84, %cst_47 {dimension_numbers = #tpu.dot_dimension_numbers<[1], [0], [0], [1], [0, 0, 1, 1], [], []>} : vector<16x8xbf16>, vector<8x32xbf16>, vector<16x32xf32> -> vector<16x32xf32>
    %86 = arith.addf %54, %85 : vector<16x32xf32>
    %87 = vector.extract_strided_slice %39 {offsets = [0, 8], sizes = [16, 8], strides = [1, 1]} : vector<16x32xf32> to vector<16x8xf32>
    %cst_48 = arith.constant 0.353553385 : f32
    %88 = vector.broadcast %cst_48 : f32 to vector<16x8xf32>
    %89 = arith.mulf %87, %88 : vector<16x8xf32>
    %90 = arith.truncf %89 : vector<16x8xf32> to vector<16x8xbf16>
    %91 = vector.extract_strided_slice %46 {offsets = [0, 8], sizes = [16, 8], strides = [1, 1]} : vector<16x32xf32> to vector<16x8xf32>
    %92 = arith.truncf %91 : vector<16x8xf32> to vector<16x8xbf16>
    %93 = vector.extract_strided_slice %53 {offsets = [0, 8], sizes = [16, 8], strides = [1, 1]} : vector<16x32xf32> to vector<16x8xf32>
    %94 = arith.truncf %93 : vector<16x8xf32> to vector<16x8xbf16>
    "tpu.trace_start"() <{level = 10 : i32, message = "qd,kd->qk"}> : () -> ()
    %cst_49 = arith.constant dense<0.000000e+00> : vector<16x16xf32>
    %95 = tpu.matmul %90, %92, %cst_49 {dimension_numbers = #tpu.dot_dimension_numbers<[1], [1], [0], [0], [0, 0, 1, 0], [], []>} : vector<16x8xbf16>, vector<16x8xbf16>, vector<16x16xf32> -> vector<16x16xf32>
    %cst_50 = arith.constant 0.000000e+00 : f32
    "tpu.trace_stop"() : () -> ()
    %96 = vector.broadcast %cst_50 : f32 to vector<1x16xf32>
    %97 = arith.cmpf ogt, %5, %96 : vector<1x16xf32>
    %cst_51 = arith.constant -1.000000e+09 : f32
    %98 = vector.shape_cast %97 : vector<1x16xi1> to vector<1x16xi1>
    %99 = vector.broadcast %98 : vector<1x16xi1> to vector<16x16xi1>
    %100 = vector.broadcast %cst_51 : f32 to vector<16x16xf32>
    %101 = arith.select %99, %95, %100 : vector<16x16xi1>, vector<16x16xf32>
    %cst_52 = arith.constant dense<0xFF800000> : vector<16xf32>
    %102 = vector.multi_reduction <maximumf>, %101, %cst_52 [1] : vector<16x16xf32> to vector<16xf32>
    %103 = vector.shape_cast %102 : vector<16xf32> to vector<16x1xf32>
    %104 = vector.broadcast %103 : vector<16x1xf32> to vector<16x16xf32>
    %105 = arith.subf %101, %104 : vector<16x16xf32>
    %106 = math.exp %105 : vector<16x16xf32>
    %cst_53 = arith.constant dense<0.000000e+00> : vector<16xf32>
    %107 = vector.multi_reduction <add>, %106, %cst_53 [1] : vector<16x16xf32> to vector<16xf32>
    %108 = vector.shape_cast %107 : vector<16xf32> to vector<16x1xf32>
    %109 = tpu.reciprocal %108 {approx = true} : vector<16x1xf32> -> vector<16x1xf32>
    %110 = vector.broadcast %109 : vector<16x1xf32> to vector<16x16xf32>
    %111 = arith.mulf %106, %110 : vector<16x16xf32>
    %112 = arith.truncf %111 : vector<16x16xf32> to vector<16x16xbf16>
    %cst_54 = arith.constant dense<0.000000e+00> : vector<16x8xf32>
    %113 = tpu.matmul %112, %94, %cst_54 {dimension_numbers = #tpu.dot_dimension_numbers<[1], [0], [0], [1], [0, 0, 1, 1], [], []>} : vector<16x16xbf16>, vector<16x8xbf16>, vector<16x8xf32> -> vector<16x8xf32>
    %114 = arith.truncf %113 : vector<16x8xf32> to vector<16x8xbf16>
    %c0_55 = arith.constant 0 : index
    %c8 = arith.constant 8 : index
    %c0_56 = arith.constant 0 : index
    %115 = vector.load %arg10[%c0_55, %c8, %c0_56] : memref<1x32x32xbf16, #tpu.memory_space<vmem>>, vector<1x8x32xbf16>
    %116 = vector.shape_cast %115 : vector<1x8x32xbf16> to vector<8x32xbf16>
    %cst_57 = arith.constant dense<0.000000e+00> : vector<16x32xf32>
    %117 = tpu.matmul %114, %116, %cst_57 {dimension_numbers = #tpu.dot_dimension_numbers<[1], [0], [0], [1], [0, 0, 1, 1], [], []>} : vector<16x8xbf16>, vector<8x32xbf16>, vector<16x32xf32> -> vector<16x32xf32>
    %118 = arith.addf %86, %117 : vector<16x32xf32>
    %119 = vector.extract_strided_slice %39 {offsets = [0, 16], sizes = [16, 8], strides = [1, 1]} : vector<16x32xf32> to vector<16x8xf32>
    %cst_58 = arith.constant 0.353553385 : f32
    %120 = vector.broadcast %cst_58 : f32 to vector<16x8xf32>
    %121 = arith.mulf %119, %120 : vector<16x8xf32>
    %122 = arith.truncf %121 : vector<16x8xf32> to vector<16x8xbf16>
    %123 = vector.extract_strided_slice %46 {offsets = [0, 16], sizes = [16, 8], strides = [1, 1]} : vector<16x32xf32> to vector<16x8xf32>
    %124 = arith.truncf %123 : vector<16x8xf32> to vector<16x8xbf16>
    %125 = vector.extract_strided_slice %53 {offsets = [0, 16], sizes = [16, 8], strides = [1, 1]} : vector<16x32xf32> to vector<16x8xf32>
    %126 = arith.truncf %125 : vector<16x8xf32> to vector<16x8xbf16>
    "tpu.trace_start"() <{level = 10 : i32, message = "qd,kd->qk"}> : () -> ()
    %cst_59 = arith.constant dense<0.000000e+00> : vector<16x16xf32>
    %127 = tpu.matmul %122, %124, %cst_59 {dimension_numbers = #tpu.dot_dimension_numbers<[1], [1], [0], [0], [0, 0, 1, 0], [], []>} : vector<16x8xbf16>, vector<16x8xbf16>, vector<16x16xf32> -> vector<16x16xf32>
    %cst_60 = arith.constant 0.000000e+00 : f32
    "tpu.trace_stop"() : () -> ()
    %128 = vector.broadcast %cst_60 : f32 to vector<1x16xf32>
    %129 = arith.cmpf ogt, %5, %128 : vector<1x16xf32>
    %cst_61 = arith.constant -1.000000e+09 : f32
    %130 = vector.shape_cast %129 : vector<1x16xi1> to vector<1x16xi1>
    %131 = vector.broadcast %130 : vector<1x16xi1> to vector<16x16xi1>
    %132 = vector.broadcast %cst_61 : f32 to vector<16x16xf32>
    %133 = arith.select %131, %127, %132 : vector<16x16xi1>, vector<16x16xf32>
    %cst_62 = arith.constant dense<0xFF800000> : vector<16xf32>
    %134 = vector.multi_reduction <maximumf>, %133, %cst_62 [1] : vector<16x16xf32> to vector<16xf32>
    %135 = vector.shape_cast %134 : vector<16xf32> to vector<16x1xf32>
    %136 = vector.broadcast %135 : vector<16x1xf32> to vector<16x16xf32>
    %137 = arith.subf %133, %136 : vector<16x16xf32>
    %138 = math.exp %137 : vector<16x16xf32>
    %cst_63 = arith.constant dense<0.000000e+00> : vector<16xf32>
    %139 = vector.multi_reduction <add>, %138, %cst_63 [1] : vector<16x16xf32> to vector<16xf32>
    %140 = vector.shape_cast %139 : vector<16xf32> to vector<16x1xf32>
    %141 = tpu.reciprocal %140 {approx = true} : vector<16x1xf32> -> vector<16x1xf32>
    %142 = vector.broadcast %141 : vector<16x1xf32> to vector<16x16xf32>
    %143 = arith.mulf %138, %142 : vector<16x16xf32>
    %144 = arith.truncf %143 : vector<16x16xf32> to vector<16x16xbf16>
    %cst_64 = arith.constant dense<0.000000e+00> : vector<16x8xf32>
    %145 = tpu.matmul %144, %126, %cst_64 {dimension_numbers = #tpu.dot_dimension_numbers<[1], [0], [0], [1], [0, 0, 1, 1], [], []>} : vector<16x16xbf16>, vector<16x8xbf16>, vector<16x8xf32> -> vector<16x8xf32>
    %146 = arith.truncf %145 : vector<16x8xf32> to vector<16x8xbf16>
    %c0_65 = arith.constant 0 : index
    %c16 = arith.constant 16 : index
    %c0_66 = arith.constant 0 : index
    %147 = vector.load %arg10[%c0_65, %c16, %c0_66] : memref<1x32x32xbf16, #tpu.memory_space<vmem>>, vector<1x8x32xbf16>
    %148 = vector.shape_cast %147 : vector<1x8x32xbf16> to vector<8x32xbf16>
    %cst_67 = arith.constant dense<0.000000e+00> : vector<16x32xf32>
    %149 = tpu.matmul %146, %148, %cst_67 {dimension_numbers = #tpu.dot_dimension_numbers<[1], [0], [0], [1], [0, 0, 1, 1], [], []>} : vector<16x8xbf16>, vector<8x32xbf16>, vector<16x32xf32> -> vector<16x32xf32>
    %150 = arith.addf %118, %149 : vector<16x32xf32>
    %151 = vector.extract_strided_slice %39 {offsets = [0, 24], sizes = [16, 8], strides = [1, 1]} : vector<16x32xf32> to vector<16x8xf32>
    %cst_68 = arith.constant 0.353553385 : f32
    %152 = vector.broadcast %cst_68 : f32 to vector<16x8xf32>
    %153 = arith.mulf %151, %152 : vector<16x8xf32>
    %154 = arith.truncf %153 : vector<16x8xf32> to vector<16x8xbf16>
    %155 = vector.extract_strided_slice %46 {offsets = [0, 24], sizes = [16, 8], strides = [1, 1]} : vector<16x32xf32> to vector<16x8xf32>
    %156 = arith.truncf %155 : vector<16x8xf32> to vector<16x8xbf16>
    %157 = vector.extract_strided_slice %53 {offsets = [0, 24], sizes = [16, 8], strides = [1, 1]} : vector<16x32xf32> to vector<16x8xf32>
    %158 = arith.truncf %157 : vector<16x8xf32> to vector<16x8xbf16>
    "tpu.trace_start"() <{level = 10 : i32, message = "qd,kd->qk"}> : () -> ()
    %cst_69 = arith.constant dense<0.000000e+00> : vector<16x16xf32>
    %159 = tpu.matmul %154, %156, %cst_69 {dimension_numbers = #tpu.dot_dimension_numbers<[1], [1], [0], [0], [0, 0, 1, 0], [], []>} : vector<16x8xbf16>, vector<16x8xbf16>, vector<16x16xf32> -> vector<16x16xf32>
    %cst_70 = arith.constant 0.000000e+00 : f32
    "tpu.trace_stop"() : () -> ()
    %160 = vector.broadcast %cst_70 : f32 to vector<1x16xf32>
    %161 = arith.cmpf ogt, %5, %160 : vector<1x16xf32>
    %cst_71 = arith.constant -1.000000e+09 : f32
    %162 = vector.shape_cast %161 : vector<1x16xi1> to vector<1x16xi1>
    %163 = vector.broadcast %162 : vector<1x16xi1> to vector<16x16xi1>
    %164 = vector.broadcast %cst_71 : f32 to vector<16x16xf32>
    %165 = arith.select %163, %159, %164 : vector<16x16xi1>, vector<16x16xf32>
    %cst_72 = arith.constant dense<0xFF800000> : vector<16xf32>
    %166 = vector.multi_reduction <maximumf>, %165, %cst_72 [1] : vector<16x16xf32> to vector<16xf32>
    %167 = vector.shape_cast %166 : vector<16xf32> to vector<16x1xf32>
    %168 = vector.broadcast %167 : vector<16x1xf32> to vector<16x16xf32>
    %169 = arith.subf %165, %168 : vector<16x16xf32>
    %170 = math.exp %169 : vector<16x16xf32>
    %cst_73 = arith.constant dense<0.000000e+00> : vector<16xf32>
    %171 = vector.multi_reduction <add>, %170, %cst_73 [1] : vector<16x16xf32> to vector<16xf32>
    %172 = vector.shape_cast %171 : vector<16xf32> to vector<16x1xf32>
    %173 = tpu.reciprocal %172 {approx = true} : vector<16x1xf32> -> vector<16x1xf32>
    %174 = vector.broadcast %173 : vector<16x1xf32> to vector<16x16xf32>
    %175 = arith.mulf %170, %174 : vector<16x16xf32>
    %176 = arith.truncf %175 : vector<16x16xf32> to vector<16x16xbf16>
    %cst_74 = arith.constant dense<0.000000e+00> : vector<16x8xf32>
    %177 = tpu.matmul %176, %158, %cst_74 {dimension_numbers = #tpu.dot_dimension_numbers<[1], [0], [0], [1], [0, 0, 1, 1], [], []>} : vector<16x16xbf16>, vector<16x8xbf16>, vector<16x8xf32> -> vector<16x8xf32>
    %178 = arith.truncf %177 : vector<16x8xf32> to vector<16x8xbf16>
    %c0_75 = arith.constant 0 : index
    %c24 = arith.constant 24 : index
    %c0_76 = arith.constant 0 : index
    %179 = vector.load %arg10[%c0_75, %c24, %c0_76] : memref<1x32x32xbf16, #tpu.memory_space<vmem>>, vector<1x8x32xbf16>
    %180 = vector.shape_cast %179 : vector<1x8x32xbf16> to vector<8x32xbf16>
    %cst_77 = arith.constant dense<0.000000e+00> : vector<16x32xf32>
    %181 = tpu.matmul %178, %180, %cst_77 {dimension_numbers = #tpu.dot_dimension_numbers<[1], [0], [0], [1], [0, 0, 1, 1], [], []>} : vector<16x8xbf16>, vector<8x32xbf16>, vector<16x32xf32> -> vector<16x32xf32>
    %182 = arith.addf %150, %181 : vector<16x32xf32>
    %c0_78 = arith.constant 0 : index
    %c0_79 = arith.constant 0 : index
    %c0_80 = arith.constant 0 : index
    %183 = vector.load %arg11[%c0_78, %c0_79, %c0_80] : memref<1x1x32xf32, #tpu.memory_space<vmem>>, vector<1x1x32xf32>
    %184 = vector.shape_cast %183 : vector<1x1x32xf32> to vector<1x32xf32>
    %185 = vector.broadcast %184 : vector<1x32xf32> to vector<16x32xf32>
    %186 = arith.addf %182, %185 : vector<16x32xf32>
    %187 = arith.addf %186, %3 : vector<16x32xf32>
    %c0_81 = arith.constant 0 : index
    %c0_82 = arith.constant 0 : index
    %c0_83 = arith.constant 0 : index
    %188 = vector.load %arg18[%c0_81, %c0_82, %c0_83] : memref<1x1x32xf32, #tpu.memory_space<vmem>>, vector<1x1x32xf32>
    %189 = vector.shape_cast %188 : vector<1x1x32xf32> to vector<1x32xf32>
    %c0_84 = arith.constant 0 : index
    %c0_85 = arith.constant 0 : index
    %c0_86 = arith.constant 0 : index
    %190 = vector.load %arg19[%c0_84, %c0_85, %c0_86] : memref<1x1x32xf32, #tpu.memory_space<vmem>>, vector<1x1x32xf32>
    %191 = vector.shape_cast %190 : vector<1x1x32xf32> to vector<1x32xf32>
    %cst_87 = arith.constant dense<0.000000e+00> : vector<16xf32>
    %192 = vector.multi_reduction <add>, %187, %cst_87 [1] : vector<16x32xf32> to vector<16xf32>
    %193 = vector.shape_cast %192 : vector<16xf32> to vector<16x1xf32>
    %cst_88 = arith.constant 3.200000e+01 : f32
    %194 = vector.broadcast %cst_88 : f32 to vector<16x1xf32>
    %195 = arith.divf %193, %194 : vector<16x1xf32>
    %196 = vector.broadcast %195 : vector<16x1xf32> to vector<16x32xf32>
    %197 = arith.subf %187, %196 : vector<16x32xf32>
    %198 = arith.mulf %197, %197 : vector<16x32xf32>
    %cst_89 = arith.constant dense<0.000000e+00> : vector<16xf32>
    %199 = vector.multi_reduction <add>, %198, %cst_89 [1] : vector<16x32xf32> to vector<16xf32>
    %200 = vector.shape_cast %199 : vector<16xf32> to vector<16x1xf32>
    %cst_90 = arith.constant 3.200000e+01 : f32
    %201 = vector.broadcast %cst_90 : f32 to vector<16x1xf32>
    %202 = arith.divf %200, %201 : vector<16x1xf32>
    %203 = vector.broadcast %195 : vector<16x1xf32> to vector<16x32xf32>
    %204 = arith.subf %187, %203 : vector<16x32xf32>
    %cst_91 = arith.constant 9.99999997E-7 : f32
    %205 = vector.broadcast %cst_91 : f32 to vector<16x1xf32>
    %206 = arith.addf %202, %205 : vector<16x1xf32>
    %207 = math.rsqrt %206 : vector<16x1xf32>
    %208 = vector.broadcast %207 : vector<16x1xf32> to vector<16x32xf32>
    %209 = arith.mulf %204, %208 : vector<16x32xf32>
    %210 = vector.broadcast %189 : vector<1x32xf32> to vector<16x32xf32>
    %211 = arith.mulf %209, %210 : vector<16x32xf32>
    %212 = vector.broadcast %191 : vector<1x32xf32> to vector<16x32xf32>
    %213 = arith.addf %211, %212 : vector<16x32xf32>
    %214 = arith.truncf %213 : vector<16x32xf32> to vector<16x32xbf16>
    %c0_92 = arith.constant 0 : index
    %c0_93 = arith.constant 0 : index
    %c0_94 = arith.constant 0 : index
    %215 = vector.load %arg14[%c0_92, %c0_93, %c0_94] : memref<1x32x64xbf16, #tpu.memory_space<vmem>>, vector<1x32x64xbf16>
    %216 = vector.shape_cast %215 : vector<1x32x64xbf16> to vector<32x64xbf16>
    %cst_95 = arith.constant dense<0.000000e+00> : vector<16x64xf32>
    %217 = tpu.matmul %214, %216, %cst_95 {dimension_numbers = #tpu.dot_dimension_numbers<[1], [0], [0], [1], [0, 0, 1, 1], [], []>} : vector<16x32xbf16>, vector<32x64xbf16>, vector<16x64xf32> -> vector<16x64xf32>
    %c0_96 = arith.constant 0 : index
    %c0_97 = arith.constant 0 : index
    %c0_98 = arith.constant 0 : index
    %218 = vector.load %arg15[%c0_96, %c0_97, %c0_98] : memref<1x1x64xf32, #tpu.memory_space<vmem>>, vector<1x1x64xf32>
    %219 = vector.shape_cast %218 : vector<1x1x64xf32> to vector<1x64xf32>
    %220 = vector.broadcast %219 : vector<1x64xf32> to vector<16x64xf32>
    %221 = arith.addf %217, %220 : vector<16x64xf32>
    %cst_99 = arith.constant 5.000000e-01 : f32
    %222 = vector.broadcast %cst_99 : f32 to vector<16x64xf32>
    %223 = arith.mulf %222, %221 : vector<16x64xf32>
    %cst_100 = arith.constant 4.471500e-02 : f32
    %224 = vector.broadcast %cst_100 : f32 to vector<16x64xf32>
    %225 = arith.mulf %224, %221 : vector<16x64xf32>
    %226 = arith.mulf %225, %221 : vector<16x64xf32>
    %227 = arith.mulf %226, %221 : vector<16x64xf32>
    %228 = arith.addf %221, %227 : vector<16x64xf32>
    %cst_101 = arith.constant 0.797884583 : f32
    %229 = vector.broadcast %cst_101 : f32 to vector<16x64xf32>
    %230 = arith.mulf %229, %228 : vector<16x64xf32>
    %231 = math.tanh %230 : vector<16x64xf32>
    %cst_102 = arith.constant 1.000000e+00 : f32
    %232 = vector.broadcast %cst_102 : f32 to vector<16x64xf32>
    %233 = arith.addf %232, %231 : vector<16x64xf32>
    %234 = arith.mulf %223, %233 : vector<16x64xf32>
    %235 = arith.truncf %234 : vector<16x64xf32> to vector<16x64xbf16>
    %c0_103 = arith.constant 0 : index
    %c0_104 = arith.constant 0 : index
    %c0_105 = arith.constant 0 : index
    %236 = vector.load %arg16[%c0_103, %c0_104, %c0_105] : memref<1x64x32xbf16, #tpu.memory_space<vmem>>, vector<1x64x32xbf16>
    %237 = vector.shape_cast %236 : vector<1x64x32xbf16> to vector<64x32xbf16>
    %cst_106 = arith.constant dense<0.000000e+00> : vector<16x32xf32>
    %238 = tpu.matmul %235, %237, %cst_106 {dimension_numbers = #tpu.dot_dimension_numbers<[1], [0], [0], [1], [0, 0, 1, 1], [], []>} : vector<16x64xbf16>, vector<64x32xbf16>, vector<16x32xf32> -> vector<16x32xf32>
    %c0_107 = arith.constant 0 : index
    %c0_108 = arith.constant 0 : index
    %c0_109 = arith.constant 0 : index
    %239 = vector.load %arg17[%c0_107, %c0_108, %c0_109] : memref<1x1x32xf32, #tpu.memory_space<vmem>>, vector<1x1x32xf32>
    %240 = vector.shape_cast %239 : vector<1x1x32xf32> to vector<1x32xf32>
    %241 = vector.broadcast %240 : vector<1x32xf32> to vector<16x32xf32>
    %242 = arith.addf %238, %241 : vector<16x32xf32>
    %243 = arith.addf %242, %187 : vector<16x32xf32>
    %c0_110 = arith.constant 0 : index
    %c0_111 = arith.constant 0 : index
    %244 = vector.load %arg21[%c0_110, %c0_111] : memref<16x32xf32, #tpu.memory_space<vmem>>, vector<16x32xf32>
    tpu.vector_store %arg21[%c0_110, %c0_111], %243 {strides = array<i32>} : memref<16x32xf32, #tpu.memory_space<vmem>>, vector<16x32xf32>,
    %c1_i32 = arith.constant 1 : i32
    %245 = arith.cmpi eq, %arg1, %c1_i32 : i32
    %246 = arith.extui %245 : i1 to i32
    %c0_i32_112 = arith.constant 0 : i32
    %247 = arith.cmpi ne, %246, %c0_i32_112 : i32
    scf.if %247 {
      %c0_113 = arith.constant 0 : index
      %c0_114 = arith.constant 0 : index
      %c0_115 = arith.constant 0 : index
      %248 = vector.load %arg20[%c0_113, %c0_114, %c0_115] : memref<1x16x32xf32, #tpu.memory_space<vmem>>, vector<1x16x32xf32>
      %249 = vector.shape_cast %248 : vector<1x16x32xf32> to vector<16x32xf32>
      %250 = vector.shape_cast %243 : vector<16x32xf32> to vector<1x16x32xf32>
      tpu.vector_store %arg20[%c0_113, %c0_114, %c0_115], %250 {strides = array<i32>} : memref<1x16x32xf32, #tpu.memory_space<vmem>>, vector<1x16x32xf32>,
    } else {
    }
    return
  }
  func.func @transform_0(%arg0: i32, %arg1: i32) -> (i32, i32, i32) {
    %c0_i32 = arith.constant 0 : i32
    %c0_i32_0 = arith.constant 0 : i32
    %c0_i32_1 = arith.constant 0 : i32
    return %arg0, %c0_i32, %c0_i32_0 : i32, i32, i32
  }
  func.func @transform_1(%arg0: i32, %arg1: i32) -> (i32, i32, i32) {
    %c0_i32 = arith.constant 0 : i32
    %c0_i32_0 = arith.constant 0 : i32
    %c0_i32_1 = arith.constant 0 : i32
    return %arg0, %c0_i32, %c0_i32_0 : i32, i32, i32
  }
  func.func @transform_2(%arg0: i32, %arg1: i32) -> (i32, i32, i32) {
    %c0_i32 = arith.constant 0 : i32
    %c0_i32_0 = arith.constant 0 : i32
    %c0_i32_1 = arith.constant 0 : i32
    return %arg1, %c0_i32, %c0_i32_0 : i32, i32, i32
  }
  func.func @transform_3(%arg0: i32, %arg1: i32) -> (i32, i32, i32) {
    %c0_i32 = arith.constant 0 : i32
    %c0_i32_0 = arith.constant 0 : i32
    %c0_i32_1 = arith.constant 0 : i32
    return %arg1, %c0_i32, %c0_i32_0 : i32, i32, i32
  }
  func.func @transform_4(%arg0: i32, %arg1: i32) -> (i32, i32, i32) {
    %c0_i32 = arith.constant 0 : i32
    %c0_i32_0 = arith.constant 0 : i32
    %c0_i32_1 = arith.constant 0 : i32
    return %arg1, %c0_i32, %c0_i32_0 : i32, i32, i32
  }
  func.func @transform_5(%arg0: i32, %arg1: i32) -> (i32, i32, i32) {
    %c0_i32 = arith.constant 0 : i32
    %c0_i32_0 = arith.constant 0 : i32
    %c0_i32_1 = arith.constant 0 : i32
    return %arg1, %c0_i32, %c0_i32_0 : i32, i32, i32
  }
  func.func @transform_6(%arg0: i32, %arg1: i32) -> (i32, i32, i32) {
    %c0_i32 = arith.constant 0 : i32
    %c0_i32_0 = arith.constant 0 : i32
    %c0_i32_1 = arith.constant 0 : i32
    return %arg1, %c0_i32, %c0_i32_0 : i32, i32, i32
  }
  func.func @transform_7(%arg0: i32, %arg1: i32) -> (i32, i32, i32) {
    %c0_i32 = arith.constant 0 : i32
    %c0_i32_0 = arith.constant 0 : i32
    %c0_i32_1 = arith.constant 0 : i32
    return %arg1, %c0_i32, %c0_i32_0 : i32, i32, i32
  }
  func.func @transform_8(%arg0: i32, %arg1: i32) -> (i32, i32, i32) {
    %c0_i32 = arith.constant 0 : i32
    %c0_i32_0 = arith.constant 0 : i32
    %c0_i32_1 = arith.constant 0 : i32
    return %arg1, %c0_i32, %c0_i32_0 : i32, i32, i32
  }
  func.func @transform_9(%arg0: i32, %arg1: i32) -> (i32, i32, i32) {
    %c0_i32 = arith.constant 0 : i32
    %c0_i32_0 = arith.constant 0 : i32
    %c0_i32_1 = arith.constant 0 : i32
    return %arg1, %c0_i32, %c0_i32_0 : i32, i32, i32
  }
  func.func @transform_10(%arg0: i32, %arg1: i32) -> (i32, i32, i32) {
    %c0_i32 = arith.constant 0 : i32
    %c0_i32_0 = arith.constant 0 : i32
    %c0_i32_1 = arith.constant 0 : i32
    return %arg1, %c0_i32, %c0_i32_0 : i32, i32, i32
  }
  func.func @transform_11(%arg0: i32, %arg1: i32) -> (i32, i32, i32) {
    %c0_i32 = arith.constant 0 : i32
    %c0_i32_0 = arith.constant 0 : i32
    %c0_i32_1 = arith.constant 0 : i32
    return %arg1, %c0_i32, %c0_i32_0 : i32, i32, i32
  }
  func.func @transform_12(%arg0: i32, %arg1: i32) -> (i32, i32, i32) {
    %c0_i32 = arith.constant 0 : i32
    %c0_i32_0 = arith.constant 0 : i32
    %c0_i32_1 = arith.constant 0 : i32
    return %arg1, %c0_i32, %c0_i32_0 : i32, i32, i32
  }
  func.func @transform_13(%arg0: i32, %arg1: i32) -> (i32, i32, i32) {
    %c0_i32 = arith.constant 0 : i32
    %c0_i32_0 = arith.constant 0 : i32
    %c0_i32_1 = arith.constant 0 : i32
    return %arg1, %c0_i32, %c0_i32_0 : i32, i32, i32
  }
  func.func @transform_14(%arg0: i32, %arg1: i32) -> (i32, i32, i32) {
    %c0_i32 = arith.constant 0 : i32
    %c0_i32_0 = arith.constant 0 : i32
    %c0_i32_1 = arith.constant 0 : i32
    return %arg1, %c0_i32, %c0_i32_0 : i32, i32, i32
  }
  func.func @transform_15(%arg0: i32, %arg1: i32) -> (i32, i32, i32) {
    %c0_i32 = arith.constant 0 : i32
    %c0_i32_0 = arith.constant 0 : i32
    %c0_i32_1 = arith.constant 0 : i32
    return %arg1, %c0_i32, %c0_i32_0 : i32, i32, i32
  }
  func.func @transform_16(%arg0: i32, %arg1: i32) -> (i32, i32, i32) {
    %c0_i32 = arith.constant 0 : i32
    %c0_i32_0 = arith.constant 0 : i32
    %c0_i32_1 = arith.constant 0 : i32
    return %arg1, %c0_i32, %c0_i32_0 : i32, i32, i32
  }
  func.func @transform_17(%arg0: i32, %arg1: i32) -> (i32, i32, i32) {
    %c0_i32 = arith.constant 0 : i32
    %c0_i32_0 = arith.constant 0 : i32
    %c0_i32_1 = arith.constant 0 : i32
    return %arg1, %c0_i32, %c0_i32_0 : i32, i32, i32
  }
  func.func @transform_18(%arg0: i32, %arg1: i32) -> (i32, i32, i32) {
    %c0_i32 = arith.constant 0 : i32
    %c0_i32_0 = arith.constant 0 : i32
    %c0_i32_1 = arith.constant 0 : i32
    return %arg0, %c0_i32, %c0_i32_0 : i32, i32, i32
  }
}

</mosaic_0001>

<bundles_post_ra>
// kernel: tpu_custom_call.1
= control target key start
LH: loop header
LB: loop body
LE: loop exit
PB: predicated region body
PF: predicated region fallthrough
CT: control target
= control target key end

     0   :  { %s3811_s0 = inlined_call_operand.vmem [shape: f32[2,16,32], index: 0, kind: input, shape index: {}]   ;;  %s3812_s1 = inlined_call_operand.vmem [shape: f32[2,1,16], index: 1, kind: input, shape index: {}]   ;;  %s3813_s2 = inlined_call_operand.vmem [shape: bf16[2,32,32], index: 2, kind: input, shape index: {}]   ;;  %s3814_s3 = inlined_call_operand.vmem [shape: f32[2,1,32], index: 3, kind: input, shape index: {}]   ;;  %s3815_s4 = inlined_call_operand.vmem [shape: bf16[2,32,32], index: 4, kind: input, shape index: {}]   ;;  %s3816_s5 = inlined_call_operand.vmem [shape: f32[2,1,32], index: 5, kind: input, shape index: {}]   ;;  %s3817_s6 = inlined_call_operand.hbm [shape: bf16[2,32,32], index: 6, kind: input, shape index: {}]   ;;  %s3818_s7 = inlined_call_operand.vmem [shape: f32[2,1,32], index: 7, kind: input, shape index: {}]   ;;  %s3819_s8 = inlined_call_operand.hbm [shape: bf16[2,32,32], index: 8, kind: input, shape index: {}]   ;;  %s3820_s9 = inlined_call_operand.vmem [shape: f32[2,1,32], index: 9, kind: input, shape index: {}]   ;;  %s3821_s10 = inlined_call_operand.vmem [shape: f32[2,1,32], index: 10, kind: input, shape index: {}]   ;;  %s3822_s11 = inlined_call_operand.vmem [shape: f32[2,1,32], index: 11, kind: input, shape index: {}]   ;;  %s3823_s12 = inlined_call_operand.hbm [shape: bf16[2,32,64], index: 12, kind: input, shape index: {}]   ;;  %s3824_s13 = inlined_call_operand.vmem [shape: f32[2,1,64], index: 13, kind: input, shape index: {}]   ;;  %s3825_s14 = inlined_call_operand.vmem [shape: bf16[2,64,32], index: 14, kind: input, shape index: {}]   ;;  %s3826_s15 = inlined_call_operand.vmem [shape: f32[2,1,32], index: 15, kind: input, shape index: {}]   ;;  %s3827_s16 = inlined_call_operand.vmem [shape: f32[2,1,32], index: 16, kind: input, shape index: {}]   ;;  %s3828_s17 = inlined_call_operand.vmem [shape: f32[2,1,32], index: 17, kind: input, shape index: {}]   ;;  %s3829_s18 = inlined_call_operand.hbm [shape: f32[2,16,32], index: 18, kind: output, shape index: {}]  }
   0x1   :  { %3856 = sst [smem:[#allocation30_spill]] %s3811_s0 }
   0x2   :  { %3857 = sst [smem:[#allocation31_spill]] %s3812_s1 }
   0x3   :  { %3858 = sst [smem:[#allocation32_spill]] %s3813_s2 }
   0x4   :  { %3859 = sst [smem:[#allocation33_spill]] %s3815_s4 }
   0x5   :  { %3860 = sst [smem:[#allocation34_spill]] %s3817_s6 }
   0x6   :  { %3861 = sst [smem:[#allocation35_spill]] %s3819_s8 }
   0x7   :  { %3862 = sst [smem:[#allocation36_spill]] %s3820_s9 }
   0x8   :  { %3863 = sst [smem:[#allocation37_spill]] %s3821_s10 }
   0x9   :  { %3864 = sst [smem:[#allocation38_spill]] %s3822_s11 }
   0xa   :  { %3865 = sst [smem:[#allocation39_spill]] %s3823_s12 }
   0xb   :  { %3866 = sst [smem:[#allocation40_spill]] %s3824_s13 }
   0xc   :  { %3867 = sst [smem:[#allocation41_spill]] %s3825_s14 }
   0xd   :  { %3868 = sst [smem:[#allocation42_spill]] %s3826_s15 }
   0xe   :  { %3869 = sst [smem:[#allocation43_spill]] %s3827_s16 }
   0xf   :  { %3870 = sst [smem:[#allocation44_spill]] %s3828_s17 }
  0x10   :  { %3871 = sst [smem:[#allocation45_spill]] %s3829_s18 }
  0x11   :  { %23 = vsyncpa [#allocation4], 0 }
  0x12   :  { %25 = vsyncpa [#allocation4 + $0x1], 0 }
  0x13   :  { %26 = vsyncpa [#allocation7], 0 }
  0x14   :  { %28 = vsyncpa [#allocation7 + $0x1], 0 }
  0x15   :  { %29 = vsyncpa [#allocation5], 0 }
  0x16   :  { %31 = vsyncpa [#allocation5 + $0x1], 0  ;;  %s3141_s27 = smov 0   ;;  %s3143_s28 = smov 0  }
  0x17   :  { %s3145_s29 = smov 0   ;;  %s3147_s30 = smov 0  }
  0x18   :  { %s3149_s0 = smov 0   ;;  %s3151_s19 = smov 0  }
  0x19   :  { %s3153_s1 = smov 0   ;;  %s3155_s20 = smov 0  }
  0x1a   :  { %s3157_s21 = smov 0   ;;  %s3159_s22 = smov 0  }
  0x1b   :  { %s3161_s2 = smov 0  }
  0x1c LB: > { %3872 = sst [smem:[#allocation13_spill]] %s2990_s27  ;;  %s3195_s23 = sadd.s32 4294967295, %s3030_s2   ;;  %s3030_s2 = sphi %s3161_s2, %s37_s2   ;;  %s3026_s22 = sphi %s3159_s22, %s3956_s22   ;;  %s3022_s21 = sphi %s3157_s21, %s3955_s21   ;;  %s3018_s20 = sphi %s3155_s20, %s3954_s20   ;;  %s3014_s1 = sphi %s3153_s1, %s3953_s1   ;;  %s3010_s19 = sphi %s3151_s19, %s3952_s19   ;;  %s3006_s0 = sphi %s3149_s0, %s3951_s0   ;;  %s3002_s30 = sphi %s3147_s30, %s3950_s30   ;;  %s2998_s29 = sphi %s3145_s29, %s3949_s29   ;;  %s2994_s28 = sphi %s3143_s28, %s3948_s28   ;;  %s2990_s27 = sphi %s3141_s27, %s3947_s27  }
  0x1d   : > { %3873 = sst [smem:[#allocation14_spill]] %s2994_s28  ;;  %s2400_s24 = sadd.s32 4294967294, %s3030_s2  }
  0x1e   : > { %3874 = sst [smem:[#allocation15_spill]] %s2998_s29  ;;  %s46_s25 = sadd.s32 1, %s3022_s21 }
  0x1f   : > { %3875 = sst [smem:[#allocation16_spill]] %s3006_s0  ;;  %s49_s26 = sadd.s32 1, %s3026_s22 }
  0x20   : > { %3876 = sst [smem:[#allocation17_spill]] %s3010_s19  ;;  %p47_p0 = scmp.ge.s32.totalorder %s46_s25, 2 }
  0x21   : > { %3877 = sst [smem:[#allocation18_spill]] %s3018_s20  ;;  %s212_s18 = sadd.s32 1, %s3010_s19 }
  0x22   : > { %3878 = sst [smem:[#allocation19_spill]] %s3022_s21  ;;  %p219_p1 = scmp.ne.s32.totalorder %s3010_s19, %s3006_s0 }
  0x23   : > { %3879 = sst [smem:[#allocation20_spill]] %s3026_s22  ;;  %p220_p2 = scmp.eq.s32.totalorder %s3030_s2, 0 }
  0x24   : > { %3880 = sst [smem:[#allocation21_spill]] %s3030_s2  ;;  %s3958_s25 = smov (%p47_p0, %s46_s25), 0 }
  0x25   : > { %3881 = sst [smem:[#allocation22_spill]] %s3958_s25  ;;  %s3960_s26 = smov (!%p47_p0, %s49_s26), %s3026_s22 }
  0x26   : > { %s209_s17 = ssub.s32 %s3022_s21, %s3958_s25  ;;  %p3209_p3 = por %p220_p2, %p219_p1 }
  0x27   : > { %p51_p4 = scmp.ge.s32.totalorder %s3960_s26, 2  ;;  %p210_p5 = scmp.eq.s32.totalorder %s209_s17, 0 }
  0x28   : > { %p225_p6 = scmp.ne.s32.totalorder %s3006_s0, %s3002_s30  ;;  %p226_p7 = scmp.eq.s32.totalorder %s3195_s23, 0 }
  0x29   : > { %s3962_s26 = smov (%p51_p4, %s3960_s26), 0  ;;  %s524_s13 = sadd.s32 1, %s2998_s29 }
  0x2a   : > { %3883 = sst [smem:[#allocation23_spill]] %s3962_s26  ;;  %p3220_p8 = por %p226_p7, %p225_p6 }
  0x2b   : > { %s3218_s15 = scalar_select %p210_p5, %s3010_s19, %s212_s18  }
  0x2c   : > { %s3885_s25 = scalar_select %p3220_p8, 1, 0 }
  0x2d   : > { %3884 = sst [smem:[#allocation24_spill]] %s3218_s15  ;;  %s521_s14 = ssub.s32 %s3026_s22, %s3962_s26 }
  0x2e   : > { %p522_p9 = scmp.eq.s32.totalorder %s521_s14, 0  ;;  %p534_p10 = scmp.ne.s32.totalorder %s2998_s29, %s2994_s28 }
  0x2f   : > { %p535_p11 = scmp.eq.s32.totalorder %s3195_s23, 3  ;;  %p540_p13 = scmp.ne.s32.totalorder %s2994_s28, %s2990_s27 }
  0x30   : > { %s3231_s17 = scalar_select %p522_p9, %s2998_s29, %s524_s13  }
  0x31   : > { %p3233_p12 = por %p535_p11, %p534_p10  ;;  %p541_p0 = scmp.eq.s32.totalorder %s2400_s24, 3 }
  0x32   : > { %3886 = sst [smem:[#allocation25_spill]] %s3231_s17  ;;  %p2658_p1 = scmp.lt.s32.totalorder %s3030_s2, 4 }
  0x33   : > { %s3887_s30 = scalar_select %p3233_p12, 1, 0 }
  0x34   : > { %s3835_s18 = sand.u32 1, %s3010_s19   ;;  %p3241_p2 = por %p541_p0, %p540_p13 }
  0x35   : > { %3888 = sst [smem:[#allocation26_spill]] %s3887_s30  ;;  %s3247_s14 = sshll.u32 %s3835_s18, 4 }
  0x36   : > { %s3889_s15 = scalar_select %p3241_p2, 1, 0 }
  0x37   : > { %s3250_s26 = sshll.u32 %s3022_s21, 8  ;;  %p3254_p4 = pnand %p2658_p1, %p3209_p3 }
  0x38   : > { %3890 = sst [smem:[#allocation27_spill]] %s3889_s15  ;;  %s630_s24 = sand.u32 1, %s3030_s2  }
  0x39   : > { %s3892_s8 = sld [smem:[#allocation35_spill]]  ;;  %s634_s18 = scalar_lea.vmem [#allocation6], %s3247_s14 }
  0x3a   : > { %s641_s21 = sshll.u32 %s634_s18, 4  ;;  %s3269_s16 = scalar_lea.sflag [#allocation7], %s630_s24  ;;  %s3266_s21 = int_to_ptr.vmem [resolvable:$true] %s641_s21 }
  0x3b   : > { %p3275_p6 = pneg %p3254_p4 }
  0x3f   : > { %s3263_s29 = scalar_lea.hbm %s3892_s8, %s3250_s26  ;;  %s2819_s18 = scalar_lea.hbm %s3892_s8, 512 }
  0x40   : > { %s2814_s15 = scalar_lea.hbm %s3263_s29, 256  ;;  %p2820_p10 = scmp.lt.u32.totalorder %s3263_s29, %s3892_s8 }
  0x41   : > { %p2815_p3 = scmp.ne.s32.totalorder %s3263_s29, %s2814_s15  ;;  %p2821_p11 = scmp.lt.u32.totalorder %s2819_s18, %s2814_s15 }
  0x42   : > { %p2823_p0 = scmp.lt.u32.totalorder %s2814_s15, %s3263_s29 }
  0x43   : > { %p2817_p7 = pnand %p3275_p6, %p2815_p3  ;;  %p2822_p13 = por %p2821_p11, %p2820_p10 }
  0x45   : > { %p2818_p9 = pneg %p2817_p7  ;;  %p2824_p1 = por %p2823_p0, %p2822_p13 }
  0x47   : > { %p2825_p5 = pnand %p2824_p1, %p2818_p9 }
  0x49   : > { %2828 = shalt.err (!%p2825_p5)
}
  0x4a   : > { %s2829_s24 = scalar_lea.vmem %s3266_s21, 256  ;;  %s3032_s22 = smov [#allocation6]  }
  0x4b   : > { %p2830_p3 = scmp.ne.s32.totalorder %s3266_s21, %s2829_s24  ;;  %s2834_s17 = sshll.u32 %s3032_s22, 4  ;;  %s2835_s17 = int_to_ptr.vmem [resolvable:$false] %s2834_s17 }
  0x4c   : > { %s2836_s11 = scalar_lea.vmem %s2835_s17, 512  ;;  %p2837_p12 = scmp.lt.s32.totalorder %s3266_s21, %s2835_s17 }
  0x4d   : > { %p2832_p7 = pnand %p2830_p3, %p3275_p6  ;;  %p2838_p8 = scmp.lt.s32.totalorder %s2836_s11, %s2829_s24 }
  0x4f   : > { %p2833_p2 = pneg %p2832_p7  ;;  %p2839_p10 = por %p2838_p8, %p2837_p12 }
  0x51   : > { %p2840_p11 = pnand %p2839_p10, %p2833_p2 }
  0x53   : > { %2843 = shalt.err (!%p2840_p11)
}
  0x54   : > { %s3843_s15 = smov 64   ;;  %s3845_s30 = smov 4  }
  0x55   : > { %2650 = dma.hbm_to_vmem [thread:$0]  (!%p3254_p4), %s3263_s29, 256, %s3266_s21, %s3269_s16, %s3843_s15, %s3843_s15, %s3845_s30  }
  0x56   : > { %p720_p8 = scmp.lt.s32.totalorder %s3030_s2, 5  ;;  %p3894_p12 = scmp.ge.s32.totalorder %s3030_s2, 1 }
  0x57   : > { %s3896_s6 = sld [smem:[#allocation34_spill]]  ;;  %s607_s11 = scalar_lea.vmem [#allocation3], %s3247_s14 }
  0x58   : > { %p3305_p2 = pnand %p3894_p12, %p720_p8  ;;  %s614_s8 = sshll.u32 %s607_s11, 4  ;;  %s3316_s8 = int_to_ptr.vmem [resolvable:$true] %s614_s8 }
  0x59   : > { %s3897_s29 = sand.u32 1, %s3010_s19  }
  0x5a   : > { %s3895_s18 = scalar_select %p3305_p2, 1, 0 }
  0x5b   : > { %s3320_s21 = scalar_lea.sflag [#allocation4], %s3897_s29 }
  0x5d   : > { %s3313_s17 = scalar_lea.hbm %s3896_s6, %s3250_s26  ;;  %s2849_s22 = scalar_lea.hbm %s3896_s6, 512 }
  0x5e   : > { %s2844_s15 = scalar_lea.hbm %s3313_s17, 256  ;;  %p2850_p0 = scmp.lt.u32.totalorder %s3313_s17, %s3896_s6 }
  0x5f   : > { %p2845_p5 = scmp.ne.s32.totalorder %s3313_s17, %s2844_s15  ;;  %p2851_p1 = scmp.lt.u32.totalorder %s2849_s22, %s2844_s15 }
  0x60   : > { %p2853_p7 = scmp.lt.u32.totalorder %s2844_s15, %s3313_s17 }
  0x61   : > { %p2847_p9 = pnand %p2845_p5, %p3275_p6  ;;  %p2852_p3 = por %p2851_p1, %p2850_p0 }
  0x63   : > { %p2848_p13 = pneg %p2847_p9  ;;  %p2854_p10 = por %p2853_p7, %p2852_p3 }
  0x65   : > { %p2855_p11 = pnand %p2854_p10, %p2848_p13 }
  0x67   : > { %2858 = shalt.err (!%p2855_p11)
}
  0x68   : > { %s2859_s11 = scalar_lea.vmem %s3316_s8, 256  ;;  %s3035_s30 = smov [#allocation3]  }
  0x69   : > { %p2860_p8 = scmp.ne.s32.totalorder %s3316_s8, %s2859_s11  ;;  %s2864_s29 = sshll.u32 %s3035_s30, 4  ;;  %s2865_s29 = int_to_ptr.vmem [resolvable:$false] %s2864_s29 }
  0x6a   : > { %s2866_s10 = scalar_lea.vmem %s2865_s29, 512  ;;  %p2867_p9 = scmp.lt.s32.totalorder %s3316_s8, %s2865_s29 }
  0x6b   : > { %p2862_p12 = pnand %p2860_p8, %p3275_p6  ;;  %p2868_p2 = scmp.lt.s32.totalorder %s2866_s10, %s2859_s11 }
  0x6d   : > { %p2863_p5 = pneg %p2862_p12  ;;  %p2869_p0 = por %p2868_p2, %p2867_p9 }
  0x6f   : > { %p2870_p1 = pnand %p2869_p0, %p2863_p5 }
  0x71   : > { %2873 = shalt.err (!%p2870_p1)
}
  0x72   : > { %s3898_s2 = smov 4   ;;  %s3899_s15 = smov 64  }
  0x73   : > { %2647 = dma.hbm_to_vmem [thread:$0]  (!%p3254_p4), %s3313_s17, 256, %s3316_s8, %s3320_s21, %s3899_s15, %s3899_s15, %s3898_s2  }
  0x74   : > { %s3900_s12 = sld [smem:[#allocation39_spill]]  ;;  %s673_s11 = scalar_lea.vmem [#allocation8], %s3247_s14 }
  0x75   : > { %s680_s29 = sshll.u32 %s673_s11, 4  ;;  %s3354_s29 = int_to_ptr.vmem [resolvable:$true] %s680_s29 }
  0x7a   : > { %s3351_s30 = scalar_lea.hbm %s3900_s12, %s3250_s26  ;;  %s2879_s17 = scalar_lea.hbm %s3900_s12, 512 }
  0x7b   : > { %s2874_s10 = scalar_lea.hbm %s3351_s30, 256  ;;  %p2880_p7 = scmp.lt.u32.totalorder %s3351_s30, %s3900_s12 }
  0x7c   : > { %p2875_p2 = scmp.ne.s32.totalorder %s3351_s30, %s2874_s10  ;;  %p2881_p10 = scmp.lt.u32.totalorder %s2879_s17, %s2874_s10 }
  0x7d   : > { %p2883_p8 = scmp.lt.u32.totalorder %s2874_s10, %s3351_s30 }
  0x7e   : > { %p2877_p13 = pnand %p2875_p2, %p3275_p6  ;;  %p2882_p11 = por %p2881_p10, %p2880_p7 }
  0x80   : > { %p2878_p3 = pneg %p2877_p13  ;;  %p2884_p12 = por %p2883_p8, %p2882_p11 }
  0x82   : > { %p2885_p5 = pnand %p2884_p12, %p2878_p3 }
  0x84   : > { %2888 = shalt.err (!%p2885_p5)
}
  0x85   : > { %s2889_s14 = scalar_lea.vmem %s3354_s29, 256  ;;  %s3036_s6 = smov [#allocation8]  }
  0x86   : > { %p2890_p9 = scmp.ne.s32.totalorder %s3354_s29, %s2889_s14  ;;  %s2894_s24 = sshll.u32 %s3036_s6, 4  ;;  %s2895_s24 = int_to_ptr.vmem [resolvable:$false] %s2894_s24 }
  0x87   : > { %s2896_s22 = scalar_lea.vmem %s2895_s24, 512  ;;  %p2897_p2 = scmp.lt.s32.totalorder %s3354_s29, %s2895_s24 }
  0x88   : > { %p2892_p0 = pnand %p2890_p9, %p3275_p6  ;;  %p2898_p13 = scmp.lt.s32.totalorder %s2896_s22, %s2889_s14 }
  0x8a   : > { %p2893_p1 = pneg %p2892_p0  ;;  %p2899_p7 = por %p2898_p13, %p2897_p2 }
  0x8c   : > { %p2900_p10 = pnand %p2899_p7, %p2893_p1 }
  0x8e   : > { %2903 = shalt.err (!%p2900_p10)
}
  0x8f   : > { %2653 = dma.hbm_to_vmem [thread:$0]  (!%p3254_p4), %s3351_s30, 256, %s3354_s29, %s3269_s16, %s3899_s15, %s3899_s15, %s3898_s2  }
  0x90   : > { %p3901_p6 = scmp.ne.s32.totalorder %s3895_s18, 0 }
  0x92   : > { %724 = sbr.rel (%p3901_p6) target bundleno = 3923 (0xf53), region = 92 }
  0x99   : > { %s726_s27 = sand.u32 1, %s3006_s0   ;;  %p3902_p3 = scmp.ne.s32.totalorder %s3885_s25, 0 }
  0x9a   : > { %s3384_s11 = sshll.u32 %s726_s27, 4  ;;  %s727_s10 = scalar_lea.sflag [#allocation4], %s726_s27 }
  0x9b   : > { %2977 = dma.done.wait (%p3902_p3), %s727_s10, 256  }
  0x9c   : > { %2979 = vsyncadd (%p3902_p3), %s727_s10, 4294967040  ;;  %s735_s13 = sand.u32 1, %s3195_s23   ;;  %s3393_s18 = scalar_lea.vmem [#allocation6], %s3384_s11 }
  0x9d   : > { %s736_s16 = scalar_lea.sflag [#allocation7], %s735_s13  ;;  %3903 = sst [smem:[#allocation28_spill]] %s3393_s18 }
  0x9e   : > { %2981 = dma.done.wait (%p3902_p3), %s736_s16, 512  }
  0x9f   : > { %2983 = vsyncadd (%p3902_p3), %s736_s16, 4294966784  ;;  %s3849_s2 = sand.u32 1, %s2994_s28   ;;  %p864_p4 = scmp.lt.s32.totalorder %s3018_s20, 1 }
  0xa0   : > { %s2416_s15 = sshll.u32 %s3849_s2, 4  ;;  %p872_p11 = scmp.lt.s32.totalorder %s3014_s1, 1 }
  0xa1   : > { %s3405_s23 = scalar_select %p864_p4, %s3018_s20, 1 }
  0xa2   : > { %s3408_s30 = scalar_select %p872_p11, %s3014_s1, 1 }
  0xa3   : > { %3904 = sst [smem:[#allocation29_spill]] %s3405_s23  ;;  %s2474_s25 = sshll.u32 %s3405_s23, 4 }
  0xa4   : > { %s3906_s24 = sld [smem:[#allocation30_spill]]  ;;  %s2475_s27 = sshll.u32 %s3408_s30, 4 }
  0xa5   : > { %s3907_s16 = sld [smem:[#allocation32_spill]]  ;;  %s3908_s4 = sld [smem:[#allocation33_spill]] }
  0xa6   : > { %s3912_s21 = sld [smem:[#allocation40_spill]]  ;;  %s3915_s8 = sld [smem:[#allocation43_spill]] }
  0xa7   : > { %s3476_s18 = scalar_lea.vmem [#allocation9], %s2416_s15  ;;  %p2425_p8 = scmp.ne.s32.totalorder %s3014_s1, 0 }
  0xa8   : > { %vm924_vm0 = vcmask (!%p2425_p8), 261120  }
  0xaa   : > { %s868_s22 = scalar_lea.vmem %s3906_s24, %s2474_s25  ;;  %s2477_s25 = sshll.u32 %s3408_s30, 5 }
  0xab   : > { %s3422_s2 = scalar_lea.vmem %s3907_s16, %s2475_s27  ;;  %s3431_s17 = scalar_lea.vmem %s3908_s4, %s2475_s27  ;;  %v922_v0 = vld [vmem:[%s868_s22] sm:$0xff] (!%p2425_p8)  ;;  %v923_v1 = vld [vmem:[%s868_s22 + $0x8] sm:$0xff] (!%p2425_p8) }
  0xac   : > { %s902_s14 = scalar_lea.vmem %s3912_s21, %s3408_s30  ;;  %s3913_s24 = sld [smem:[#allocation41_spill]]  ;;  %925 = vst.msk [vmem:[#allocation2] sm:$0xff] (!%p2425_p8), %vm924_vm0, %v922_v0  ;;  %926 = vst.msk [vmem:[#allocation2 + $0x8] sm:$0xff] (!%p2425_p8), %vm924_vm0, %v923_v1 }
  0xad   : > { %s3914_s16 = sld [smem:[#allocation42_spill]]  ;;  %s913_s19 = scalar_lea.vmem %s3915_s8, %s3408_s30 }
  0xae   : > { %s3916_s27 = sld [smem:[#allocation44_spill]]  ;;  %s748_s4 = scalar_lea.vmem [#allocation8], %s3384_s11 }
  0xaf   : > { %921 = sbr.rel (%p2425_p8) target bundleno = 182 (0xb6), region = 108 }
  0xb2   : > { %s3461_s26 = scalar_lea.vmem %s3913_s24, %s2477_s25 }
  0xb3   : > { %s910_s9 = scalar_lea.vmem %s3914_s16, %s3408_s30 }
  0xb4   : > { %s916_s29 = scalar_lea.vmem %s3916_s27, %s3408_s30 }
  0xb6 PF: > { %v3479_v2 = vld [vmem:[#allocation2] sm:$0xff]  ;;  %vm932_vm1 = vcmask 261120   ;;  %v3481_v3 = vld [vmem:[#allocation2 + $0x8] sm:$0xff]  ;;  %s3917_s15 = scalar_lea.vmem [#allocation3], %s3384_s11  ;;  %v3037_v18 = vmov 0.0   ;;  %vm3038_vm2 = vmmov 0   ;;  %s3924_s20 = scalar_lea.vmem %s3818_s7, %s3408_s30 }
  0xb7   : > { %v933_v4 = vsel %vm932_vm1, %v3479_v2, 0.0  ;;  %v936_v5 = vsel %vm932_vm1, %v3481_v3, 0.0  ;;  %v2758_v16 = vld [vmem:[%s3422_s2] sm:$0xff]   ;;  %2520 = vmatprep.subr.bf16.mxu1 %v3037_v18  ;;  %2536 = vmatprep.subr.bf16.mxu0 %v3037_v18  ;;  %v2760_v19 = vld [vmem:[%s3422_s2 + $0x8] sm:$0xff]   ;;  %s3918_s23 = smov %s3917_s15  ;;  %s3919_s25 = sld [smem:[#allocation37_spill]]  ;;  %vm1177_vm3 = vcmask 64512  }
  0xb8   : > { %934 = vadd.xlane.f32.xlu0 %v933_v4  ;;  %v2759_v17 = vld [vmem:[%s3917_s15] sm:$0xff]   ;;  %2521 = vmatpush3.bf16.msra.mxu1 %v2758_v16  ;;  %v2761_v20 = vld [vmem:[%s3918_s23 + $0x8] sm:$0xff]   ;;  %s3921_s24 = sld [smem:[#allocation38_spill]]  ;;  %s3925_s15 = scalar_lea.vmem %s3816_s5, %s3408_s30  ;;  %vm1234_vm6 = vcmask 130048   ;;  %vm1435_vm7 = vcmask 1043456   ;;  %vm2056_vm8 = vcmask 523264  }
  0xb9   : > { %2537 = vmatpush3.bf16.msra.mxu0 %v2759_v17  ;;  %2522 = vmatprep.subr.bf16.mxu1 %v3037_v18  ;;  %v2762_v37 = vld [vmem:[%s3431_s17] sm:$0xff]   ;;  %v2763_v39 = vld [vmem:[%s3431_s17 + $0x8] sm:$0xff]   ;;  %s3923_s17 = scalar_lea.vmem %s3814_s3, %s3408_s30  ;;  %s3039_s23 = smov 120  }
  0xba   : > { %2538 = vmatprep.subr.bf16.mxu0 %v3037_v18  ;;  %2524 = vmatprep.mubr.msk.bf16.mxu1 %vm3038_vm2, %v3037_v18  ;;  %v2428_v40 = vld [vmem:[%s3923_s17] ss:$0 sm:$0xff]  ;;  %s3926_s2 = sld [smem:[#allocation29_spill]]  ;;  %s3041_s6 = smov 112  }
  0xbb   : > { %2540 = vmatprep.mubr.msk.bf16.mxu0 %vm3038_vm2, %v3037_v18  ;;  %v2436_v42 = vld [vmem:[%s3924_s20] ss:$0 sm:$0xff]  ;;  %s3930_s17 = sld [smem:[#allocation36_spill]]  ;;  %p2465_p12 = scmp.ne.s32.totalorder %s3014_s1, 1 }
  0xbc   : > { %937 = vadd.xlane.f32.xlu0 %v936_v5  ;;  %2523 = vmatpush3.bf16.msra.mxu1 %v2760_v19  ;;  %v2432_v58 = vld [vmem:[%s3925_s15] ss:$0 sm:$0xff] }
  0xbd   : > { %2539 = vmatpush3.bf16.msra.mxu0 %v2761_v20  ;;  %2528 = vmatprep.subr.bf16.mxu1 %v3037_v18  ;;  %s3920_s16 = scalar_lea.vmem %s3919_s25, %s3408_s30 }
  0xbe   : > { %2550 = vmatprep.subr.bf16.mxu0 %v3037_v18  ;;  %v2426_v29 = vld [vmem:[%s3920_s16] ss:$0 sm:$0xff]  ;;  %s3922_s10 = scalar_lea.vmem %s3921_s24, %s3408_s30  ;;  %s3927_s16 = sld [smem:[#allocation31_spill]] }
  0xbf   : > { %v2427_v33 = vld [vmem:[%s3922_s10] ss:$0 sm:$0xff]  ;;  %s3929_s24 = sld [smem:[#allocation28_spill]]  ;;  %s3042_s10 = smov 104  }
  0xc1   : > { %s3931_s12 = scalar_lea.vmem %s3930_s17, %s3408_s30 }
  0xc4   : > { %s3928_s21 = scalar_lea.vmem %s3927_s16, %s3926_s2 }
 0x145   : > { %v935_v6 = vpop.xlane.xlu0 %934 }
 0x146   : > { %v940_v7 = vmul.f32 0.03125, %v935_v6 }
 0x148   : > { %v942_v8 = vsub.f32 %v3479_v2, %v940_v7 }
 0x149   : > { %v938_v9 = vpop.xlane.xlu0 %937 }
 0x14a   : > { %v941_v10 = vmul.f32 0.03125, %v938_v9  ;;  %v944_v11 = vmul.f32 %v942_v8, %v942_v8  ;;  %v929_v9 = vld [vmem:[%s3928_s21] sm:$0x1] }
 0x14b   : > { %vm1225_vm4 = vcmp.gt.f32.partialorder %v929_v9, 0.0 }
 0x14c   : > { %v943_v12 = vsub.f32 %v3481_v3, %v941_v10  ;;  %v946_v13 = vsel %vm932_vm1, %v944_v11, 0.0 }
 0x14d   : > { %947 = vadd.xlane.f32.xlu1 %v946_v13 }
 0x14e   : > { %v945_v14 = vmul.f32 %v943_v12, %v943_v12 }
 0x150   : > { %v949_v15 = vsel %vm932_vm1, %v945_v14, 0.0 }
 0x151   : > { %950 = vadd.xlane.f32.xlu1 %v949_v15 }
 0x1da   : > { %v948_v21 = vpop.xlane.xlu1 %947 }
 0x1db   : > { %v952_v22 = vmul.f32 0.03125, %v948_v21 }
 0x1dd   : > { %v954_v23 = vadd.f32 1e-06, %v952_v22 }
 0x1de   : > { %v951_v24 = vpop.xlane.xlu1 %950 }
 0x1df   : > { %2770 = vrsqrt.f32 %v954_v23  ;;  %v953_v25 = vmul.f32 0.03125, %v951_v24 }
 0x1e1   : > { %v955_v26 = vadd.f32 1e-06, %v953_v25 }
 0x1e3   : > { %2772 = vrsqrt.f32 %v955_v26 }
 0x1e9   : > { %v2771_v27 = vpop.eup %2770 }
 0x1ea   : > { %v958_v28 = vmul.f32 %v2771_v27, %v942_v8  ;;  %v1227_v8 = vlaneseq }
 0x1ec   : > { %v966_v32 = vmul.f32 %v2426_v29, %v958_v28  ;;  %v1228_v10 = vshrl.u32 %v1227_v8, 7 }
 0x1ed   : > { %v2773_v30 = vpop.eup %2772 }
 0x1ee   : > { %v959_v31 = vmul.f32 %v2773_v30, %v943_v12  ;;  %v974_v35 = vadd.f32 %v2427_v33, %v966_v32  ;;  %v1229_v11 = vsub.s32 0, %v1228_v10  ;;  %v3040_v12 = vmov 0  }
 0x1ef   : > { %v1226_v13 = vsel %vm1225_vm4, 1, %v3040_v12 }
 0x1f0   : > { %v967_v34 = vmul.f32 %v2426_v29, %v959_v31  ;;  %v3574_v14 = vrot.slane %v1226_v13, %v1229_v11 }
 0x1f2   : > { %v975_v36 = vadd.f32 %v2427_v33, %v967_v34  ;;  %vm1231_vm5 = vcmp.eq.s32.totalorder %v3574_v14, 1 }
 0x1f4   : > { %v976_v38 = vpack.c.bf16 %v975_v36, %v974_v35 }
 0x1f6   : > { %2525 = vmatmul.mubr.msk.bf16.vlgmr.msra.gmra.mrb[0].mxu1 %vm932_vm1, %v976_v38  ;;  %2541 = vmatmul.mubr.msk.bf16.vlgmr.msra.gmra.mrb[0].mxu0 %vm932_vm1, %v976_v38 }
 0x1f7   : > { %2529 = vmatpush3.bf16.msra.mxu1 %v2762_v37  ;;  %2532 = vmatprep.mubr.msk.bf16.mxu1 %vm3038_vm2, %v3037_v18 }
 0x1f8   : > { %2530 = vmatprep.subr.bf16.mxu1 %v3037_v18  ;;  %2552 = vmatprep.mubr.msk.bf16.mxu0 %vm3038_vm2, %v3037_v18 }
 0x1fb   : > { %2531 = vmatpush3.bf16.msra.mxu1 %v2763_v39 }
 0x1fc   : > { %2544 = vmatprep.subr.bf16.mxu1 %v3037_v18 }
 0x1fe   : > { %2533 = vmatmul.mubr.msk.bf16.vlgmr.msra.gmra.mrb[4].mxu1 %vm932_vm1, %v976_v38 }
 0x1ff   : > { %2546 = vmatprep.mubr.msk.bf16.mxu1 %vm3038_vm2, %v3037_v18 }
 0x2c9   : > { %v1037_v41 = vpop.f32.mrb[0].mxu1  ;;  %v1165_v43 = vpop.f32.mrb[0].mxu0 }
 0x2ca   : > { %v1038_v44 = vadd.f32 %v2428_v40, %v1037_v41  ;;  %v2526_v45 = vpop.f32.mrb[1].mxu1  ;;  %v2542_v46 = vpop.f32.mrb[1].mxu0  ;;  %v1166_v49 = vadd.f32 %v2436_v42, %v1165_v43 }
 0x2cb   : > { %v1040_v47 = vpop.f32.mrb[2].mxu1  ;;  %v1168_v48 = vpop.f32.mrb[2].mxu0 }
 0x2cc   : > { %v1041_v50 = vadd.f32 %v2428_v40, %v1040_v47  ;;  %v1169_v51 = vadd.f32 %v2436_v42, %v1168_v48  ;;  %v2527_v52 = vpop.f32.mrb[3].mxu1  ;;  %v2543_v53 = vpop.f32.mrb[3].mxu0  ;;  %v1172_v54 = vmul.f32 0.35355338, %v1038_v44 }
 0x2ce   : > { %v1173_v55 = vmul.f32 0.35355338, %v1041_v50  ;;  %v3540_v56 = vpack.c.bf16 %v1169_v51, %v1166_v49 }
 0x2d0   : > { %v3542_v57 = vpack.c.bf16 %v1173_v55, %v1172_v54  ;;  %2551 = vmatpush3.bf16.msra.mxu0 %v3540_v56 }
 0x2d1   : > { %v1101_v59 = vpop.f32.mrb[4].mxu1  ;;  %2562 = vmatprep.subr.bf16.mxu0 %v3037_v18 }
 0x2d2   : > { %1305 = vrot.lane.b32.xlu1 %v3542_v57, %s3039_s23  ;;  %v2534_v60 = vpop.f32.mrb[5].mxu1  ;;  %v1102_v62 = vadd.f32 %v2432_v58, %v1101_v59 }
 0x2d3   : > { %v1104_v61 = vpop.f32.mrb[6].mxu1 }
 0x2d4   : > { %v1105_v63 = vadd.f32 %v2432_v58, %v1104_v61  ;;  %v2535_v0 = vpop.f32.mrb[7].mxu1  ;;  %v1431_v61 = vld [vmem:[%s3929_s24 + $0x4] sm:$0xf] }
 0x2d6   : > { %v3553_v1 = vpack.c.bf16 %v1105_v63, %v1102_v62  ;;  %v1437_v62 = vsel %vm1435_vm7, %v1431_v61, 0 }
 0x2d8   : > { %1308 = vrot.lane.b32.xlu0 %v3553_v1, %s3039_s23  ;;  %v1182_v4 = vsel %vm1177_vm3, %v3553_v1, 0 }
 0x2d9   : > { %2545 = vmatpush3.bf16.xpose.msra.mxu1 %v1182_v4 }
 0x2da   : > { %2556 = vmatprep.subr.bf16.mxu1 %v3037_v18 }
 0x2e0   : > { %2547 = vmatmul.mubr.msk.bf16.vlgmr.msra.gmra.mrb[8].mxu1 %vm1177_vm3, %v3542_v57 }
 0x2e1   : > { %2558 = vmatprep.mubr.msk.bf16.mxu1 %vm3038_vm2, %v3037_v18 }
 0x344   : > { %v1306_v7 = vpop.permute.xlu1 %1305 }
 0x34a   : > { %v1309_v5 = vpop.permute.xlu0 %1308 }
 0x34b   : > { %v1314_v6 = vsel %vm1177_vm3, %v1309_v5, 0 }
 0x34c   : > { %2557 = vmatpush3.bf16.xpose.msra.mxu1 %v1314_v6 }
 0x34d   : > { %2568 = vmatprep.subr.bf16.mxu1 %v3037_v18 }
 0x353   : > { %2559 = vmatmul.mubr.msk.bf16.vlgmr.msra.gmra.mrb[12].mxu1 %vm1177_vm3, %v1306_v7  ;;  %v1303_v7 = vld [vmem:[%s3929_s24] sm:$0xf] }
 0x354   : > { %2570 = vmatprep.mubr.msk.bf16.mxu1 %vm3038_vm2, %v3037_v18  ;;  %2569 = vmatpush3.bf16.msra.mxu1 %v1437_v62  ;;  %v1484_v11 = vsel %vm1435_vm7, %v1303_v7, 0 }
 0x355   : > { %2580 = vmatprep.subr.bf16.mxu1 %v3037_v18 }
 0x3b3   : > { %v1218_v15 = vpop.f32.mrb[8].mxu1 }
 0x3b4   : > { %v1232_v16 = vsel %vm1231_vm5, %v1218_v15, -1e+09  ;;  %v2548_v17 = vpop.f32.mrb[9].mxu1 }
 0x3b5   : > { %v1221_v19 = vpop.f32.mrb[10].mxu1  ;;  %v1235_v20 = vsel %vm1234_vm6, %v1232_v16, -inf }
 0x3b6   : > { %v1233_v21 = vsel %vm1231_vm5, %v1221_v19, -1e+09  ;;  %1236 = vmax.xlane.f32.xlu1 %v1235_v20  ;;  %v2549_v22 = vpop.f32.mrb[11].mxu1 }
 0x3b7   : > { %v1238_v23 = vsel %vm1234_vm6, %v1233_v21, -inf }
 0x3b8   : > { %1239 = vmax.xlane.f32.xlu0 %v1238_v23 }
 0x426   : > { %v1350_v24 = vpop.f32.mrb[12].mxu1 }
 0x427   : > { %v1357_v25 = vsel %vm1231_vm5, %v1350_v24, -1e+09  ;;  %v2560_v26 = vpop.f32.mrb[13].mxu1 }
 0x428   : > { %v1353_v27 = vpop.f32.mrb[14].mxu1  ;;  %v1359_v28 = vsel %vm1234_vm6, %v1357_v25, -inf }
 0x429   : > { %v1358_v29 = vsel %vm1231_vm5, %v1353_v27, -1e+09  ;;  %1360 = vmax.xlane.f32.xlu0 %v1359_v28  ;;  %v2561_v30 = vpop.f32.mrb[15].mxu1 }
 0x42a   : > { %v1362_v31 = vsel %vm1234_vm6, %v1358_v29, -inf }
 0x42b   : > { %1363 = vmax.xlane.f32.xlu1 %v1362_v31 }
 0x443   : > { %v1237_v32 = vpop.xlane.xlu1 %1236 }
 0x444   : > { %v1241_v33 = vsub.f32 %v1232_v16, %v1237_v32 }
 0x445   : > { %v1240_v34 = vpop.xlane.xlu0 %1239 }
 0x446   : > { %v1243_v35 = vmul.f32 1.442695, %v1241_v33  ;;  %v1242_v36 = vsub.f32 %v1233_v21, %v1240_v34 }
 0x448   : > { %2774 = vpow2.f32 %v1243_v35  ;;  %v1245_v37 = vmul.f32 1.442695, %v1242_v36 }
 0x44a   : > { %2776 = vpow2.f32 %v1245_v37 }
 0x452   : > { %v2775_v38 = vpop.eup %2774 }
 0x453   : > { %v1247_v39 = vsel %vm1234_vm6, %v2775_v38, 0.0 }
 0x454   : > { %v2777_v40 = vpop.eup %2776  ;;  %1248 = vadd.xlane.f32.xlu0 %v1247_v39 }
 0x455   : > { %v1250_v41 = vsel %vm1234_vm6, %v2777_v40, 0.0 }
 0x456   : > { %1251 = vadd.xlane.f32.xlu1 %v1250_v41 }
 0x4b6   : > { %v1361_v42 = vpop.xlane.xlu0 %1360 }
 0x4b7   : > { %v1365_v43 = vsub.f32 %v1357_v25, %v1361_v42 }
 0x4b8   : > { %v1364_v44 = vpop.xlane.xlu1 %1363 }
 0x4b9   : > { %v1367_v45 = vmul.f32 1.442695, %v1365_v43  ;;  %v1366_v46 = vsub.f32 %v1358_v29, %v1364_v44 }
 0x4bb   : > { %2778 = vpow2.f32 %v1367_v45  ;;  %v1369_v47 = vmul.f32 1.442695, %v1366_v46 }
 0x4bd   : > { %2780 = vpow2.f32 %v1369_v47 }
 0x4c5   : > { %v2779_v48 = vpop.eup %2778 }
 0x4c6   : > { %v1371_v49 = vsel %vm1234_vm6, %v2779_v48, 0.0 }
 0x4c7   : > { %v2781_v50 = vpop.eup %2780  ;;  %1372 = vadd.xlane.f32.xlu0 %v1371_v49 }
 0x4c8   : > { %v1374_v51 = vsel %vm1234_vm6, %v2781_v50, 0.0 }
 0x4c9   : > { %1375 = vadd.xlane.f32.xlu1 %v1374_v51 }
 0x4da   : > { %1529 = vrot.lane.b32.xlu1 %v3553_v1, %s3041_s6 }
 0x4dd   : > { %1383 = vrot.lane.b32.xlu0 %v3540_v56, %s3039_s23 }
 0x4de   : > { %1527 = vrot.lane.b32.xlu1 %v3542_v57, %s3041_s6 }
 0x4e1   : > { %v1249_v52 = vpop.xlane.xlu0 %1248 }
 0x4e2   : > { %2782 = vrcp.f32 %v1249_v52 }
 0x4e3   : > { %v1252_v53 = vpop.xlane.xlu1 %1251 }
 0x4e4   : > { %2784 = vrcp.f32 %v1252_v53 }
 0x4ec   : > { %v2783_v54 = vpop.eup %2782 }
 0x4ed   : > { %v1255_v58 = vmul.f32 %v2783_v54, %v2775_v38 }
 0x4ee   : > { %v2785_v55 = vpop.eup %2784 }
 0x4ef   : > { %v1256_v59 = vmul.f32 %v2785_v55, %v2777_v40 }
 0x4f1   : > { %v1257_v60 = vpack.c.bf16 %v1256_v59, %v1255_v58 }
 0x4f3   : > { %2553 = vmatmul.mubr.msk.bf16.vlgmr.msra.gmra.mrb[4].mxu0 %vm1234_vm6, %v1257_v60 }
 0x4f4   : > { %2564 = vmatprep.mubr.msk.bf16.mxu0 %vm3038_vm2, %v3037_v18 }
 0x554   : > { %v1373_v63 = vpop.xlane.xlu0 %1372 }
 0x555   : > { %2786 = vrcp.f32 %v1373_v63 }
 0x556   : > { %v1376_v0 = vpop.xlane.xlu1 %1375 }
 0x557   : > { %2788 = vrcp.f32 %v1376_v0 }
 0x558   : > { %v1384_v4 = vpop.permute.xlu0 %1383 }
 0x559   : > { %2563 = vmatpush3.bf16.msra.mxu0 %v1384_v4 }
 0x55a   : > { %2574 = vmatprep.subr.bf16.mxu0 %v3037_v18  ;;  %v1530_v21 = vpop.permute.xlu1 %1529 }
 0x55b   : > { %v1535_v25 = vsel %vm1177_vm3, %v1530_v21, 0 }
 0x55e   : > { %v1528_v26 = vpop.permute.xlu1 %1527 }
 0x55f   : > { %v2787_v5 = vpop.eup %2786 }
 0x560   : > { %v1379_v8 = vmul.f32 %v2787_v5, %v2779_v48  ;;  %v1651_v5 = vld [vmem:[%s3929_s24 + $0x8] sm:$0xf] }
 0x561   : > { %v2789_v6 = vpop.eup %2788 }
 0x562   : > { %v1380_v9 = vmul.f32 %v2789_v6, %v2781_v50  ;;  %v1656_v6 = vsel %vm1435_vm7, %v1651_v5, 0 }
 0x564   : > { %v1381_v10 = vpack.c.bf16 %v1380_v9, %v1379_v8 }
 0x566   : > { %2565 = vmatmul.mubr.msk.bf16.vlgmr.msra.gmra.mrb[8].mxu0 %vm1234_vm6, %v1381_v10 }
 0x567   : > { %2575 = vmatpush3.bf16.msra.mxu0 %v1484_v11  ;;  %2576 = vmatprep.mubr.msk.bf16.mxu0 %vm3038_vm2, %v3037_v18 }
 0x568   : > { %2586 = vmatprep.subr.bf16.mxu0 %v3037_v18 }
 0x5c6   : > { %v1295_v12 = vpop.f32.mrb[4].mxu0 }
 0x5c7   : > { %v2554_v13 = vpop.f32.mrb[5].mxu0 }
 0x5c8   : > { %v1298_v15 = vpop.f32.mrb[6].mxu0 }
 0x5c9   : > { %v1302_v16 = vpack.c.bf16 %v1298_v15, %v1295_v12  ;;  %v2555_v17 = vpop.f32.mrb[7].mxu0 }
 0x5cb   : > { %2577 = vmatmul.mubr.msk.bf16.vlgmr.msra.gmra.mrb[12].mxu0 %vm1177_vm3, %v1302_v16 }
 0x5cc   : > { %2588 = vmatprep.mubr.msk.bf16.mxu0 %vm3038_vm2, %v3037_v18 }
 0x639   : > { %v1423_v19 = vpop.f32.mrb[8].mxu0 }
 0x63a   : > { %v2566_v20 = vpop.f32.mrb[9].mxu0 }
 0x63b   : > { %v1426_v22 = vpop.f32.mrb[10].mxu0 }
 0x63c   : > { %v1430_v23 = vpack.c.bf16 %v1426_v22, %v1423_v19  ;;  %v2567_v24 = vpop.f32.mrb[11].mxu0 }
 0x63e   : > { %2571 = vmatmul.mubr.msk.bf16.vlgmr.msra.gmra.mrb[16].mxu1 %vm1177_vm3, %v1430_v23 }
 0x63f   : > { %2581 = vmatpush3.bf16.xpose.msra.mxu1 %v1535_v25  ;;  %2582 = vmatprep.mubr.msk.bf16.mxu1 %vm3038_vm2, %v3037_v18 }
 0x640   : > { %2592 = vmatprep.subr.bf16.mxu1 %v3037_v18 }
 0x646   : > { %2583 = vmatmul.mubr.msk.bf16.vlgmr.msra.gmra.mrb[20].mxu1 %vm1177_vm3, %v1528_v26 }
 0x647   : > { %2594 = vmatprep.mubr.msk.bf16.mxu1 %vm3038_vm2, %v3037_v18  ;;  %2593 = vmatpush3.bf16.msra.mxu1 %v1656_v6 }
 0x648   : > { %2604 = vmatprep.subr.bf16.mxu1 %v3037_v18 }
 0x69e   : > { %v1520_v27 = vpop.f32.mrb[12].mxu0 }
 0x69f   : > { %v2578_v28 = vpop.f32.mrb[13].mxu0 }
 0x6a0   : > { %v1523_v29 = vpop.f32.mrb[14].mxu0 }
 0x6a1   : > { %v2579_v30 = vpop.f32.mrb[15].mxu0 }
 0x711   : > { %v1473_v31 = vpop.f32.mrb[16].mxu1 }
 0x712   : > { %v3623_v32 = vadd.f32 %v1520_v27, %v1473_v31  ;;  %v2572_v33 = vpop.f32.mrb[17].mxu1  ;;  %v1825_v31 = vld [vmem:[%s3929_s24 + $0xc] sm:$0xf] }
 0x713   : > { %v1476_v34 = vpop.f32.mrb[18].mxu1  ;;  %v1830_v33 = vsel %vm1435_vm7, %v1825_v31, 0  ;;  %v2766_v31 = vld [vmem:[%s3461_s26] sm:$0xff]  }
 0x714   : > { %v3625_v35 = vadd.f32 %v1523_v29, %v1476_v34  ;;  %v2573_v36 = vpop.f32.mrb[19].mxu1 }
 0x719   : > { %v1571_v37 = vpop.f32.mrb[20].mxu1 }
 0x71a   : > { %v1578_v38 = vsel %vm1231_vm5, %v1571_v37, -1e+09  ;;  %v2584_v39 = vpop.f32.mrb[21].mxu1 }
 0x71b   : > { %v1574_v40 = vpop.f32.mrb[22].mxu1  ;;  %v1580_v41 = vsel %vm1234_vm6, %v1578_v38, -inf }
 0x71c   : > { %v1579_v42 = vsel %vm1231_vm5, %v1574_v40, -1e+09  ;;  %1581 = vmax.xlane.f32.xlu1 %v1580_v41  ;;  %v2585_v43 = vpop.f32.mrb[23].mxu1 }
 0x71d   : > { %v1583_v44 = vsel %vm1234_vm6, %v1579_v42, -inf }
 0x71e   : > { %1584 = vmax.xlane.f32.xlu0 %v1583_v44 }
 0x72d   : > { %1603 = vrot.lane.b32.xlu1 %v3540_v56, %s3041_s6 }
 0x731   : > { %1701 = vrot.lane.b32.xlu1 %v3542_v57, %s3042_s10 }
 0x7a9   : > { %v1582_v45 = vpop.xlane.xlu1 %1581 }
 0x7aa   : > { %v1586_v46 = vsub.f32 %v1578_v38, %v1582_v45 }
 0x7ab   : > { %v1585_v47 = vpop.xlane.xlu0 %1584 }
 0x7ac   : > { %v1588_v48 = vmul.f32 1.442695, %v1586_v46  ;;  %v1587_v49 = vsub.f32 %v1579_v42, %v1585_v47 }
 0x7ad   : > { %v1604_v50 = vpop.permute.xlu1 %1603 }
 0x7ae   : > { %2790 = vpow2.f32 %v1588_v48  ;;  %v1590_v51 = vmul.f32 1.442695, %v1587_v49  ;;  %2587 = vmatpush3.bf16.msra.mxu0 %v1604_v50 }
 0x7af   : > { %2598 = vmatprep.subr.bf16.mxu0 %v3037_v18 }
 0x7b0   : > { %2792 = vpow2.f32 %v1590_v51 }
 0x7b8   : > { %v2791_v52 = vpop.eup %2790 }
 0x7b9   : > { %v1592_v53 = vsel %vm1234_vm6, %v2791_v52, 0.0 }
 0x7ba   : > { %v2793_v54 = vpop.eup %2792  ;;  %1593 = vadd.xlane.f32.xlu0 %v1592_v53 }
 0x7bb   : > { %v1595_v55 = vsel %vm1234_vm6, %v2793_v54, 0.0 }
 0x7be   : > { %1596 = vadd.xlane.f32.xlu0 %v1595_v55 }
 0x7d4   : > { %1703 = vrot.lane.b32.xlu0 %v3553_v1, %s3042_s10  ;;  %v1702_v1 = vpop.permute.xlu1 %1701 }
 0x847   : > { %v1594_v57 = vpop.xlane.xlu0 %1593 }
 0x848   : > { %2794 = vrcp.f32 %v1594_v57 }
 0x84b   : > { %v1597_v58 = vpop.xlane.xlu0 %1596 }
 0x84c   : > { %2796 = vrcp.f32 %v1597_v58 }
 0x84f   : > { %v1704_v63 = vpop.permute.xlu0 %1703 }
 0x850   : > { %v1709_v4 = vsel %vm1177_vm3, %v1704_v63, 0 }
 0x852   : > { %v2795_v59 = vpop.eup %2794 }
 0x853   : > { %v1600_v61 = vmul.f32 %v2795_v59, %v2791_v52  ;;  %v2452_v52 = vld [vmem:[%s3931_s12] ss:$0 sm:$0xff] }
 0x856   : > { %v2797_v60 = vpop.eup %2796 }
 0x857   : > { %v1601_v62 = vmul.f32 %v2797_v60, %v2793_v54 }
 0x859   : > { %v1602_v0 = vpack.c.bf16 %v1601_v62, %v1600_v61 }
 0x85b   : > { %2589 = vmatmul.mubr.msk.bf16.vlgmr.msra.gmra.mrb[16].mxu0 %vm1234_vm6, %v1602_v0 }
 0x85c   : > { %2599 = vmatpush3.bf16.xpose.msra.mxu0 %v1709_v4  ;;  %2600 = vmatprep.mubr.msk.bf16.mxu0 %vm3038_vm2, %v3037_v18 }
 0x85d   : > { %2610 = vmatprep.subr.bf16.mxu0 %v3037_v18 }
 0x863   : > { %2601 = vmatmul.mubr.msk.bf16.vlgmr.msra.gmra.mrb[20].mxu0 %vm1177_vm3, %v1702_v1 }
 0x864   : > { %2612 = vmatprep.mubr.msk.bf16.mxu0 %vm3038_vm2, %v3037_v18  ;;  %2611 = vmatpush3.bf16.msra.mxu0 %v1830_v33  ;;  %v2767_v33 = vld [vmem:[%s3461_s26 + $0x8] sm:$0xff]  }
 0x865   : > { %2624 = vmatprep.subr.bf16.mxu0 %v3037_v18 }
 0x92e   : > { %v1643_v7 = vpop.f32.mrb[16].mxu0 }
 0x92f   : > { %v2590_v8 = vpop.f32.mrb[17].mxu0 }
 0x930   : > { %v1646_v9 = vpop.f32.mrb[18].mxu0 }
 0x931   : > { %v1650_v10 = vpack.c.bf16 %v1646_v9, %v1643_v7  ;;  %v2591_v11 = vpop.f32.mrb[19].mxu0 }
 0x932   : > { %v2764_v11 = vld [vmem:[%s748_s4] sm:$0xff]  }
 0x933   : > { %2595 = vmatmul.mubr.msk.bf16.vlgmr.msra.gmra.mrb[24].mxu1 %vm1177_vm3, %v1650_v10 }
 0x934   : > { %2606 = vmatprep.mubr.msk.bf16.mxu1 %vm3038_vm2, %v3037_v18 }
 0x936   : > { %v1745_v12 = vpop.f32.mrb[20].mxu0 }
 0x937   : > { %v1752_v13 = vsel %vm1231_vm5, %v1745_v12, -1e+09  ;;  %v2602_v15 = vpop.f32.mrb[21].mxu0  ;;  %v2765_v12 = vld [vmem:[%s748_s4 + $0x8] sm:$0xff]  }
 0x938   : > { %v1748_v16 = vpop.f32.mrb[22].mxu0  ;;  %v1754_v17 = vsel %vm1234_vm6, %v1752_v13, -inf }
 0x939   : > { %v1753_v19 = vsel %vm1231_vm5, %v1748_v16, -1e+09  ;;  %1755 = vmax.xlane.f32.xlu1 %v1754_v17  ;;  %v2603_v20 = vpop.f32.mrb[23].mxu0 }
 0x93a   : > { %v1757_v21 = vsel %vm1234_vm6, %v1753_v19, -inf }
 0x93b   : > { %1758 = vmax.xlane.f32.xlu0 %v1757_v21 }
 0x9c6   : > { %v1756_v22 = vpop.xlane.xlu1 %1755 }
 0x9c7   : > { %v1760_v23 = vsub.f32 %v1752_v13, %v1756_v22 }
 0x9c8   : > { %v1759_v24 = vpop.xlane.xlu0 %1758 }
 0x9c9   : > { %v1762_v25 = vmul.f32 1.442695, %v1760_v23  ;;  %v1761_v26 = vsub.f32 %v1753_v19, %v1759_v24  ;;  %v2453_v23 = vld [vmem:[%s913_s19] ss:$0 sm:$0xff] }
 0x9cb   : > { %2798 = vpow2.f32 %v1762_v25  ;;  %v1764_v27 = vmul.f32 1.442695, %v1761_v26 }
 0x9cd   : > { %2800 = vpow2.f32 %v1764_v27  ;;  %v2454_v27 = vld [vmem:[%s916_s29] ss:$0 sm:$0xff] }
 0x9d5   : > { %v2799_v28 = vpop.eup %2798 }
 0x9d6   : > { %v1766_v29 = vsel %vm1234_vm6, %v2799_v28, 0.0 }
 0x9d7   : > { %v2801_v30 = vpop.eup %2800  ;;  %1767 = vadd.xlane.f32.xlu0 %v1766_v29 }
 0x9d8   : > { %v1769_v14 = vsel %vm1234_vm6, %v2801_v30, 0.0 }
 0x9d9   : > { %1770 = vadd.xlane.f32.xlu1 %v1769_v14 }
 0x9ed   : > { %1777 = vrot.lane.b32.xlu0 %v3540_v56, %s3042_s10 }
 0xa06   : > { %v1692_v34 = vpop.f32.mrb[24].mxu1 }
 0xa07   : > { %v1699_v36 = vadd.f32 %v1692_v34, %v3623_v32  ;;  %v2596_v37 = vpop.f32.mrb[25].mxu1  ;;  %v2768_v34 = vld [vmem:[%s3461_s26 + $0x10] sm:$0xff]  }
 0xa08   : > { %v1695_v38 = vpop.f32.mrb[26].mxu1  ;;  %v2455_v37 = vld [vmem:[%s902_s14] ss:$0 sm:$0xff] }
 0xa09   : > { %v1700_v39 = vadd.f32 %v1695_v38, %v3625_v35  ;;  %v2597_v40 = vpop.f32.mrb[27].mxu1 }
 0xa64   : > { %v1768_v41 = vpop.xlane.xlu0 %1767 }
 0xa65   : > { %2802 = vrcp.f32 %v1768_v41 }
 0xa66   : > { %v1771_v42 = vpop.xlane.xlu1 %1770 }
 0xa67   : > { %2804 = vrcp.f32 %v1771_v42 }
 0xa68   : > { %v1778_v43 = vpop.permute.xlu0 %1777 }
 0xa69   : > { %2605 = vmatpush3.bf16.msra.mxu1 %v1778_v43 }
 0xa6a   : > { %2616 = vmatprep.subr.bf16.mxu1 %v3037_v18 }
 0xa6f   : > { %v2803_v56 = vpop.eup %2802 }
 0xa70   : > { %v1774_v45 = vmul.f32 %v2803_v56, %v2799_v28 }
 0xa71   : > { %v2805_v44 = vpop.eup %2804 }
 0xa72   : > { %v1775_v46 = vmul.f32 %v2805_v44, %v2801_v30 }
 0xa74   : > { %v1776_v47 = vpack.c.bf16 %v1775_v46, %v1774_v45 }
 0xa76   : > { %2607 = vmatmul.mubr.msk.bf16.vlgmr.msra.gmra.mrb[28].mxu1 %vm1234_vm6, %v1776_v47 }
 0xa77   : > { %2620 = vmatprep.mubr.msk.bf16.mxu1 %vm3038_vm2, %v3037_v18  ;;  %2617 = vmatpush3.bf16.msra.mxu1 %v2764_v11 }
 0xa78   : > { %2618 = vmatprep.subr.bf16.mxu1 %v3037_v18 }
 0xa7b   : > { %2619 = vmatpush3.bf16.msra.mxu1 %v2765_v12 }
 0xb49   : > { %v1817_v32 = vpop.f32.mrb[28].mxu1 }
 0xb4a   : > { %v2608_v35 = vpop.f32.mrb[29].mxu1 }
 0xb4b   : > { %v1820_v48 = vpop.f32.mrb[30].mxu1 }
 0xb4c   : > { %v1824_v49 = vpack.c.bf16 %v1820_v48, %v1817_v32  ;;  %v2609_v50 = vpop.f32.mrb[31].mxu1 }
 0xb4e   : > { %2613 = vmatmul.mubr.msk.bf16.vlgmr.msra.gmra.mrb[24].mxu0 %vm1177_vm3, %v1824_v49 }
 0xb4f   : > { %2632 = vmatprep.mubr.msk.bf16.mxu0 %vm3038_vm2, %v3037_v18  ;;  %2625 = vmatpush3.bf16.msra.mxu0 %v2766_v31 }
 0xb50   : > { %2626 = vmatprep.subr.bf16.mxu0 %v3037_v18 }
 0xb53   : > { %2627 = vmatpush3.bf16.msra.mxu0 %v2767_v33 }
 0xb54   : > { %2628 = vmatprep.subr.bf16.mxu0 %v3037_v18 }
 0xb57   : > { %2629 = vmatpush3.bf16.msra.mxu0 %v2768_v34 }
 0xb58   : > { %2630 = vmatprep.subr.bf16.mxu0 %v3037_v18 }
 0xc21   : > { %v1866_v51 = vpop.f32.mrb[24].mxu0 }
 0xc22   : > { %v1873_v53 = vadd.f32 %v1866_v51, %v1699_v36  ;;  %v2614_v54 = vpop.f32.mrb[25].mxu0  ;;  %v2769_v36 = vld [vmem:[%s3461_s26 + $0x18] sm:$0xff]  }
 0xc23   : > { %v1869_v55 = vpop.f32.mrb[26].mxu0  ;;  %2631 = vmatpush3.bf16.msra.mxu0 %v2769_v36 }
 0xc24   : > { %v1882_v57 = vadd.f32 %v2452_v52, %v1873_v53  ;;  %v1874_v58 = vadd.f32 %v1869_v55, %v1700_v39  ;;  %v2615_v59 = vpop.f32.mrb[27].mxu0 }
 0xc26   : > { %v3684_v60 = vadd.f32 %v1882_v57, %v3479_v2  ;;  %v1883_v61 = vadd.f32 %v2452_v52, %v1874_v58 }
 0xc28   : > { %v3687_v62 = vadd.f32 %v1883_v61, %v3481_v3  ;;  %v1888_v63 = vsel %vm932_vm1, %v3684_v60, 0.0  ;;  %v2459_v61 = vld [vmem:[%s910_s9] ss:$0 sm:$0xff] }
 0xc29   : > { %1889 = vadd.xlane.f32.xlu1 %v1888_v63 }
 0xc2a   : > { %v1891_v0 = vsel %vm932_vm1, %v3687_v62, 0.0 }
 0xc2d   : > { %1892 = vadd.xlane.f32.xlu1 %v1891_v0 }
 0xcb6   : > { %v1890_v4 = vpop.xlane.xlu1 %1889 }
 0xcb7   : > { %v1894_v1 = vmul.f32 0.03125, %v1890_v4 }
 0xcb9   : > { %v1896_v5 = vsub.f32 %v3684_v60, %v1894_v1 }
 0xcba   : > { %v1893_v2 = vpop.xlane.xlu1 %1892 }
 0xcbb   : > { %v1895_v6 = vmul.f32 0.03125, %v1893_v2  ;;  %v1898_v7 = vmul.f32 %v1896_v5, %v1896_v5 }
 0xcbd   : > { %v1897_v3 = vsub.f32 %v3687_v62, %v1895_v6  ;;  %v1900_v8 = vsel %vm932_vm1, %v1898_v7, 0.0 }
 0xcbe   : > { %1901 = vadd.xlane.f32.xlu1 %v1900_v8 }
 0xcbf   : > { %v1899_v9 = vmul.f32 %v1897_v3, %v1897_v3 }
 0xcc1   : > { %v1903_v10 = vsel %vm932_vm1, %v1899_v9, 0.0 }
 0xcc2   : > { %1904 = vadd.xlane.f32.xlu1 %v1903_v10 }
 0xd4b   : > { %v1902_v13 = vpop.xlane.xlu1 %1901 }
 0xd4c   : > { %v1906_v15 = vmul.f32 0.03125, %v1902_v13 }
 0xd4e   : > { %v1908_v16 = vadd.f32 1e-06, %v1906_v15 }
 0xd4f   : > { %v1905_v17 = vpop.xlane.xlu1 %1904 }
 0xd50   : > { %2806 = vrsqrt.f32 %v1908_v16  ;;  %v1907_v19 = vmul.f32 0.03125, %v1905_v17 }
 0xd52   : > { %v1909_v20 = vadd.f32 1e-06, %v1907_v19 }
 0xd54   : > { %2808 = vrsqrt.f32 %v1909_v20 }
 0xd5a   : > { %v2807_v21 = vpop.eup %2806 }
 0xd5b   : > { %v1912_v22 = vmul.f32 %v2807_v21, %v1896_v5 }
 0xd5d   : > { %v1920_v25 = vmul.f32 %v2453_v23, %v1912_v22 }
 0xd5e   : > { %v2809_v24 = vpop.eup %2808 }
 0xd5f   : > { %v1913_v26 = vmul.f32 %v2809_v24, %v1897_v3  ;;  %v1928_v29 = vadd.f32 %v2454_v27, %v1920_v25 }
 0xd61   : > { %v1921_v28 = vmul.f32 %v2453_v23, %v1913_v26 }
 0xd63   : > { %v1929_v30 = vadd.f32 %v2454_v27, %v1921_v28 }
 0xd65   : > { %v1930_v14 = vpack.c.bf16 %v1929_v30, %v1928_v29 }
 0xd67   : > { %2621 = vmatmul.mubr.msk.bf16.vlgmr.msra.gmra.mrb[32].mxu1 %vm932_vm1, %v1930_v14 }
 0xe3a   : > { %v1991_v38 = vpop.f32.mrb[32].mxu1 }
 0xe3b   : > { %v1992_v39 = vadd.f32 %v2455_v37, %v1991_v38  ;;  %v2622_v40 = vpop.f32.mrb[33].mxu1 }
 0xe3c   : > { %v1994_v41 = vpop.f32.mrb[34].mxu1 }
 0xe3d   : > { %v2000_v42 = vmul.f32 0.044715, %v1992_v39  ;;  %v1995_v43 = vadd.f32 %v2455_v37, %v1994_v41  ;;  %v2623_v56 = vpop.f32.mrb[35].mxu1  ;;  %v1998_v53 = vmul.f32 0.5, %v1992_v39 }
 0xe3f   : > { %v2002_v44 = vmul.f32 %v2000_v42, %v1992_v39  ;;  %v2001_v45 = vmul.f32 0.044715, %v1995_v43  ;;  %v1999_v54 = vmul.f32 0.5, %v1995_v43 }
 0xe41   : > { %v2004_v46 = vmul.f32 %v2002_v44, %v1992_v39  ;;  %v2003_v47 = vmul.f32 %v2001_v45, %v1995_v43 }
 0xe43   : > { %v2006_v32 = vadd.f32 %v2004_v46, %v1992_v39  ;;  %v2005_v35 = vmul.f32 %v2003_v47, %v1995_v43 }
 0xe45   : > { %v2008_v18 = vmul.f32 0.7978846, %v2006_v32  ;;  %v2007_v48 = vadd.f32 %v2005_v35, %v1995_v43 }
 0xe47   : > { %2810 = vtanh.f32 %v2008_v18  ;;  %v2009_v49 = vmul.f32 0.7978846, %v2007_v48 }
 0xe49   : > { %2812 = vtanh.f32 %v2009_v49 }
 0xe51   : > { %v2811_v50 = vpop.eup %2810 }
 0xe52   : > { %v2012_v51 = vadd.f32 1.0, %v2811_v50 }
 0xe53   : > { %v2813_v52 = vpop.eup %2812 }
 0xe54   : > { %v2013_v55 = vadd.f32 1.0, %v2813_v52  ;;  %v2014_v57 = vmul.f32 %v2012_v51, %v1998_v53 }
 0xe56   : > { %v2015_v58 = vmul.f32 %v2013_v55, %v1999_v54 }
 0xe58   : > { %v2016_v59 = vpack.c.bf16 %v2015_v58, %v2014_v57 }
 0xe5a   : > { %2633 = vmatmul.mubr.msk.bf16.vlgmr.msra.gmra.mrb[28].mxu0 %vm2056_vm8, %v2016_v59 }
 0xf2d   : > { %v2094_v63 = vpop.f32.mrb[28].mxu0 }
 0xf2e   : > { %v2095_v0 = vadd.f32 %v2459_v61, %v2094_v63  ;;  %v2634_v4 = vpop.f32.mrb[29].mxu0  ;;  %2108 = sbr.rel (%p2465_p12) target bundleno = 3893 (0xf35), region = 112 }
 0xf2f   : > { %v2097_v1 = vpop.f32.mrb[30].mxu0 }
 0xf30   : > { %v2101_v5 = vadd.f32 %v2095_v0, %v3684_v60  ;;  %v2098_v2 = vadd.f32 %v2459_v61, %v2097_v1  ;;  %v2635_v6 = vpop.f32.mrb[31].mxu0 }
 0xf32   : > { %2103 = vst.msk [vmem:[#allocation2] sm:$0xff] %vm932_vm1, %v2101_v5  ;;  %v2102_v7 = vadd.f32 %v2098_v2, %v3687_v62  ;;  %2109 = vst.msk [vmem:[%s3476_s18] sm:$0xff] (!%p2465_p12), %vm932_vm1, %v2101_v5 }
 0xf34   : > { %2104 = vst.msk [vmem:[#allocation2 + $0x8] sm:$0xff] %vm932_vm1, %v2102_v7  ;;  %2110 = vst.msk [vmem:[%s3476_s18 + $0x8] sm:$0xff] (!%p2465_p12), %vm932_vm1, %v2102_v7 }
 0xf35 PF: > { %s3936_s9 = sld [smem:[#allocation18_spill]]  ;;  %s3937_s30 = sld [smem:[#allocation14_spill]] }
 0xf36   : > { %s3938_s2 = sld [smem:[#allocation26_spill]]  ;;  %s3939_s21 = sld [smem:[#allocation45_spill]] }
 0xf37   : > { %s2125_s10 = sshll.u32 %s3476_s18, 4  ;;  %s3043_s17 = smov [#allocation9]   ;;  %s3746_s10 = int_to_ptr.vmem [resolvable:$true] %s2125_s10 }
 0xf38   : > { %s2904_s28 = scalar_lea.vmem %s3746_s10, 256  ;;  %s2908_s12 = sshll.u32 %s3043_s17, 4  ;;  %s2909_s12 = int_to_ptr.vmem [resolvable:$false] %s2908_s12 }
 0xf39   : > { %p2905_p5 = scmp.ne.s32.totalorder %s3746_s10, %s2904_s28  ;;  %s2910_s8 = scalar_lea.vmem %s2909_s12, 512 }
 0xf3a   : > { %p2911_p2 = scmp.lt.s32.totalorder %s3746_s10, %s2909_s12  ;;  %p2912_p13 = scmp.lt.s32.totalorder %s2910_s8, %s2904_s28 }
 0xf3b   : > { %s2478_s22 = sshll.u32 %s3936_s9, 8  ;;  %s3941_s1 = sand.u32 1, %s3937_s30  }
 0xf3c   : > { %s3940_s6 = smov %s3939_s21  ;;  %s3743_s24 = scalar_lea.hbm %s3939_s21, %s2478_s22 }
 0xf3d   : > { %s3750_s13 = scalar_lea.sflag [#allocation5], %s3941_s1  ;;  %p3942_p9 = scmp.ne.s32.totalorder %s3938_s2, 0 }
 0xf3e   : > { %p2913_p7 = por %p2912_p13, %p2911_p2 }
 0xf3f   : > { %p2906_p0 = pnand %p2905_p5, %p3942_p9 }
 0xf41   : > { %p2907_p1 = pneg %p2906_p0 }
 0xf43   : > { %p2914_p10 = pnand %p2913_p7, %p2907_p1 }
 0xf45   : > { %2917 = shalt.err (!%p2914_p10)
}
 0xf46   : > { %s2918_s18 = scalar_lea.hbm %s3743_s24, 256  ;;  %s2922_s4 = scalar_lea.hbm %s3940_s6, 512 }
 0xf47   : > { %p2919_p6 = scmp.ne.s32.totalorder %s3743_s24, %s2918_s18  ;;  %p2923_p11 = scmp.lt.u32.totalorder %s3743_s24, %s3940_s6 }
 0xf48   : > { %p2924_p8 = scmp.lt.u32.totalorder %s2922_s4, %s2918_s18  ;;  %p2926_p5 = scmp.lt.u32.totalorder %s2918_s18, %s3743_s24 }
 0xf49   : > { %p2920_p3 = pnand %p2919_p6, %p3942_p9 }
 0xf4a   : > { %p2925_p12 = por %p2924_p8, %p2923_p11 }
 0xf4b   : > { %p2921_p4 = pneg %p2920_p3 }
 0xf4c   : > { %p2927_p0 = por %p2926_p5, %p2925_p12 }
 0xf4e   : > { %p2928_p1 = pnand %p2927_p0, %p2921_p4 }
 0xf50   : > { %2931 = shalt.err (!%p2928_p1)
}
 0xf51   : > { %s3044_s19 = smov 128   ;;  %s3045_s29 = smov 8  }
 0xf52   : > { %2642 = dma.vmem_to_hbm [thread:$0]  (%p3942_p9), %s3746_s10, 256, %s3743_s24, %s3750_s13, %s3044_s19, %s3044_s19, %s3045_s29  }
 0xf53 PF: > { %s3943_s15 = sld [smem:[#allocation21_spill]]  ;;  %s3944_s26 = sld [smem:[#allocation13_spill]] }
 0xf54   : > { %s3945_s14 = sld [smem:[#allocation27_spill]] }
 0xf59   : > { %p2659_p2 = scmp.ge.s32.totalorder %s3943_s15, 2  ;;  %s2140_s23 = sand.u32 1, %s3944_s26  }
 0xf5a   : > { %p3946_p13 = scmp.ne.s32.totalorder %s3945_s14, 0  ;;  %s2141_s9 = scalar_lea.sflag [#allocation5], %s2140_s23 }
 0xf5c   : > { %p2655_p7 = pnand %p2659_p2, %p3946_p13 }
 0xf5e   : > { %2985 = dma.done.wait (!%p2655_p7), %s2141_s9, 256  }
 0xf5f   : > { %2987 = vsyncadd (!%p2655_p7), %s2141_s9, 4294967040  ;;  %s37_s2 = sadd.s32 1, %s3943_s15   ;;  %s3947_s27 = sld [smem:[#allocation14_spill]] }
 0xf60   : > { %p34_p10 = scmp.ge.s32.totalorder %s37_s2, 6   ;;  %s3948_s28 = sld [smem:[#allocation15_spill]] }
 0xf61   : > { %s3949_s29 = sld [smem:[#allocation25_spill]]  ;;  %s3950_s30 = sld [smem:[#allocation16_spill]] }
 0xf62   : > { %s3951_s0 = sld [smem:[#allocation17_spill]]  ;;  %s3952_s19 = sld [smem:[#allocation24_spill]] }
 0xf63   : > { %s3953_s1 = sld [smem:[#allocation19_spill]]  ;;  %s3954_s20 = sld [smem:[#allocation20_spill]] }
 0xf64   : > { %s3955_s21 = sld [smem:[#allocation22_spill]]  ;;  %s3956_s22 = sld [smem:[#allocation23_spill]] }
 0xf65   :  { %36 = sbr.rel (!%p34_p10) target bundleno = 28 (0x1c), region = 214 }
 0xf6c   :  { %2146 = vsyncpa [#allocation4], 1 }
 0xf6d   :  { %2148 = vsyncpa [#allocation4 + $0x1], 1 }
 0xf6e   :  { %2149 = vsyncpa [#allocation7], 1 }
 0xf6f   :  { %2151 = vsyncpa [#allocation7 + $0x1], 1 }
 0xf70   :  { %2152 = vsyncpa [#allocation5], 1 }
 0xf71   :  { %2154 = vsyncpa [#allocation5 + $0x1], 1 }

</bundles_post_ra>
